<compile_context>
chip_gen: v7x
topology: tpu7x:2x2x1
jax: 0.10.0
libtpu: 0.0.40
codegen_flags: <defaults>
</compile_context>

<pallas_src>
import functools

import jax
import jax.numpy as jnp
from jax.experimental import pallas as pl
from jax.experimental.pallas import tpu as pltpu

# ----------------------------- config ------------------------------------- #
BATCH = 2
NUM_POINTS = 8          # query points
N_PC = 64               # points produced by the (stand-in) point decoder
VOX_RES = 4             # config.vox_res
BB_MIN, BB_MAX = -0.5, 0.5
IM_ENC_LAYERS = (8, 16, 32, 32, 32)
ENC_FEAT_SIZE = sum(IM_ENC_LAYERS[3:]) * 7 + 1024 + 3  # kept for documentation
H = W = 16
BN_EPS = 1e-5


def _round_up(x, m):
    return ((x + m - 1) // m) * m


# ==== fused Pallas kernel: PointMLP + max + spatial_transformer + occ + vox = #
def _fused_head_kernel(pc_ref, fg2_ref, w1b_ref, wstack_ref, small_ref, voxw_ref,
                       trans_ref, voxfeat_ref, *, vox_res, bb_min, bb_max):
    f32 = jnp.float32
    bf = wstack_ref.dtype                       # bf16 MXU operand dtype

    pc = pc_ref[...]                            # (TB, 3, N_PC) f32
    small = small_ref[...]                      # (6, 128) f32: ptw rows 0..2, b1, b2f, b3p

    # --- M.PointMLP stand-in (fused producer) + torch.max(feat_coarse, -1)[0]
    # feat[b, n, f] = sum_c pc[b, c, n] * ptw[c, f]  (K=3 done on the VPU, no
    # awkward tiny-K matmul); the (TB, N_PC, 128) intermediate lives in VMEM
    # only.  Max over the point axis is a cheap sublane reduce.
    feat = (pc[:, 0, :, None] * small[0][None, None, :]
            + pc[:, 1, :, None] * small[1][None, None, :]
            + pc[:, 2, :, None] * small[2][None, None, :])     # (TB, N_PC, 128) f32
    feat_coarse = jnp.max(feat, axis=1)                        # (TB, 128) f32

    # --- spatial_transformer MLP (eval-mode BN + biases folded into weights).
    # Linear(640,128) split so cat([feat_coarse, feat_g2]) never materializes.
    b1 = small[3][None, :]
    b2 = small[4][None, :]
    b3 = small[5][None, :]
    h = (jnp.dot(feat_coarse.astype(bf), wstack_ref[0], preferred_element_type=f32)
         + jnp.dot(fg2_ref[...], w1b_ref[...], preferred_element_type=f32)
         + b1)
    h = jnp.where(h > 0, h, 0.2 * h)                           # LeakyReLU(0.2), f32
    h = jnp.dot(h.astype(bf), wstack_ref[1], preferred_element_type=f32) + b2
    h = jnp.where(h > 0, h, 0.2 * h)
    # final layer padded to 128 output columns -> lane-dense unmasked store;
    # wrapper slices [:, :12].
    trans_ref[...] = jnp.dot(h.astype(bf), wstack_ref[2],
                             preferred_element_type=f32) + b3

    # --- create_occ + M.VoxelEncoder2 stand-in (fused consumer) -------------
    # TODO(synk): assumes utils.get_kdtree builds the tree over a regular
    # linspace(bb_min, bb_max, vox_res)^3 grid flattened in 'ij' order, so
    # nearest-neighbour == per-axis rounding to the grid.
    V = vox_res
    step = (bb_max - bb_min) / (V - 1)

    def vox_idx(p):
        return jnp.clip(jnp.floor((p - bb_min) / step + 0.5),
                        0.0, V - 1.0).astype(jnp.int32)

    flat = (vox_idx(pc[:, 0, :]) * (V * V)
            + vox_idx(pc[:, 1, :]) * V
            + vox_idx(pc[:, 2, :]))                            # (TB, N_PC) int32
    lane = jax.lax.broadcasted_iota(jnp.int32, flat.shape + (V ** 3,), 2)
    # TODO(synk): for vox_res >= 16 restructure this into a chunked fori_loop
    # OR/max accumulation into a (TB, V^3) scratch so the (TB, N_PC, V^3)
    # one-hot intermediate never materializes (VMEM blow-up, first on v7x).
    onehot = (lane == flat[:, :, None]).astype(f32)            # (TB, N_PC, V^3)
    occ = jnp.max(onehot, axis=1)                              # (TB, V^3), exact 0/1
    # vox encoder fused: occ never written to HBM; output padded to 128 lanes.
    voxfeat_ref[...] = jnp.dot(occ.astype(bf), voxw_ref[...],
                               preferred_element_type=f32)


def fused_head(pc, feat_g2, p, vox_res=VOX_RES, bb_min=BB_MIN, bb_max=BB_MAX):
    """PointMLP + channel-max + spatial_transformer + create_occ + vox encoder
    in one pallas_call, batch-tiled grid with double-buffered pipelining."""
    B, n_pc, _ = pc.shape
    # Batch tile: pad to full sublanes; production guidance (perf review):
    #   v5e: multiples of 128; v6e: 256-1024 rows; v7x: ~256 rows (64 MiB VMEM,
    #   2 TCs picked up automatically via the "parallel" batch axis).
    TB = min(256, _round_up(B, 8))
    BP = _round_up(B, TB)

    pc_t = jnp.transpose(pc, (0, 2, 1))                        # (B, 3, n_pc)
    pc_t = jnp.pad(pc_t, ((0, BP - B), (0, 0), (0, 0)))
    fg2 = jnp.pad(feat_g2.astype(jnp.bfloat16), ((0, BP - B), (0, 0)))

    kernel = functools.partial(_fused_head_kernel, vox_res=vox_res,
                               bb_min=bb_min, bb_max=bb_max)
    # TODO(synk): if the DMA of the batch-tiled streams is still exposed in a
    # trace at production sizes, sweep pipeline_mode=pl.Buffered(3) on them.
    trans_pad, voxf_pad = pl.pallas_call(
        kernel,
        out_shape=(jax.ShapeDtypeStruct((BP, 128), jnp.float32),
                   jax.ShapeDtypeStruct((BP, 128), jnp.float32)),
        grid_spec=pltpu.PrefetchScalarGridSpec(
            num_scalar_prefetch=0,
            grid=(BP // TB,),
            in_specs=[
                # batch-tiled activation streams
                pl.BlockSpec((TB, 3, n_pc), lambda i: (i, 0, 0)),
                pl.BlockSpec((TB, 512), lambda i: (i, 0)),
                # weights: constant index maps -> VMEM-resident across steps
                pl.BlockSpec((512, 128), lambda i: (0, 0)),
                pl.BlockSpec((3, 128, 128), lambda i: (0, 0, 0)),
                pl.BlockSpec((6, 128), lambda i: (0, 0)),
                pl.BlockSpec((vox_res ** 3, 128), lambda i: (0, 0)),
            ],
            out_specs=(pl.BlockSpec((TB, 128), lambda i: (i, 0)),
                       pl.BlockSpec((TB, 128), lambda i: (i, 0))),
        ),
        compiler_params=pltpu.CompilerParams(
            dimension_semantics=("parallel",),
            vmem_limit_bytes=32 * 1024 * 1024),
    )(pc_t, fg2, p["k_w1b"], p["k_wstack"], p["k_small"], p["k_voxw"])

    trans_mat = trans_pad[:B, :12].reshape(B, 4, 3)
    vox_feat0 = voxf_pad[:B, :32]
    return trans_mat, vox_feat0


# ============================ parameters =================================== #
def pack_kernel_params(st, pt_mlp_w, vox_enc_w):
    """Fold eval-mode BatchNorm1d + biases into the following Linear weights,
    pad narrow outputs to 128 lanes, and pack everything the fused kernel needs
    into a few DMA-friendly slabs.

    TODO(synk): BatchNorm1d is folded in eval mode (running stats); PyTorch
    .train() would use batch statistics instead.
    """
    s1 = st["bn1_gamma"] / jnp.sqrt(st["bn1_var"] + BN_EPS)
    t1 = st["bn1_beta"] - st["bn1_mean"] * s1
    s2 = st["bn2_gamma"] / jnp.sqrt(st["bn2_var"] + BN_EPS)
    t2 = st["bn2_beta"] - st["bn2_mean"] * s2

    w2f = s1[:, None] * st["w2"]
    b2f = t1 @ st["w2"] + st["b2"]
    w3f = s2[:, None] * st["w3"]
    b3f = t2 @ st["w3"] + st["b3"]

    # pad the 12-wide output layer to 128 lanes (lane-dense store)
    w3p = jnp.zeros((128, 128), jnp.float32).at[:, :12].set(w3f)
    b3p = jnp.zeros((128,), jnp.float32).at[:12].set(b3f)

    bf16 = jnp.bfloat16  # MXU operands bf16, accumulation stays f32
    k_wstack = jnp.stack([st["w1"][:128], w2f, w3p]).astype(bf16)   # (3,128,128)
    k_w1b = st["w1"][128:].astype(bf16)                             # (512,128)
    k_small = jnp.concatenate(
        [pt_mlp_w, st["b1"][None, :], b2f[None, :], b3p[None, :]],
        axis=0).astype(jnp.float32)                                 # (6,128)
    k_voxw = (jnp.zeros((vox_enc_w.shape[0], 128), jnp.float32)
              .at[:, :vox_enc_w.shape[1]].set(vox_enc_w)).astype(bf16)
    return {"k_wstack": k_wstack, "k_w1b": k_w1b,
            "k_small": k_small, "k_voxw": k_voxw}


def init_params(key):
    ks = jax.random.split(key, 12)

    def nrm(k, shape, scale=0.05):
        return (jax.random.normal(k, shape) * scale).astype(jnp.float32)

    params = {
        # --- stand-in sub-module weights (TODO(synk): real M.* undefined) ---
        "im_enc_w":   nrm(ks[0], (3, 512)),
        "im_enc2_gw": nrm(ks[1], (3, 512)),
        "im_enc2_lw": nrm(ks[2], (3, 64)),
        "pt_dec_w":   nrm(ks[3], (512, N_PC * 3)),
        "pt_mlp_w":   nrm(ks[4], (3, 128)),
        "vox_enc_w":  nrm(ks[5], (VOX_RES ** 3, 32)),
        "percep_w":   nrm(ks[6], (3, 64)),
        "sdf_w1":     nrm(ks[7], (3 + 32 + 64 + 80, 128)),
        "sdf_b1":     jnp.zeros((128,), jnp.float32),
        "sdf_w2":     nrm(ks[8], (128, 1)),
        "sdf_b2":     jnp.zeros((1,), jnp.float32),
    }

    zeros128 = jnp.zeros((128,), jnp.float32)
    ones128 = jnp.ones((128,), jnp.float32)
    st_raw = {  # raw PyTorch-style spatial_transformer parameters
        "w1": nrm(ks[9], (128 + 512, 128)), "b1": zeros128,
        "bn1_gamma": ones128, "bn1_beta": zeros128,
        "bn1_mean": zeros128, "bn1_var": ones128,
        "w2": nrm(ks[10], (128, 128)), "b2": zeros128,
        "bn2_gamma": ones128, "bn2_beta": zeros128,
        "bn2_mean": zeros128, "bn2_var": ones128,
        "w3": nrm(ks[11], (128, 12)), "b3": jnp.zeros((12,), jnp.float32),
    }
    params.update(pack_kernel_params(st_raw, params["pt_mlp_w"],
                                     params["vox_enc_w"]))
    return params


# ============================== forward ==================================== #
def lihs_forward(img, query, grass_80d, params, trans_mat=None):
    B, N, _ = query.shape

    # TODO(synk): M.ResEncoder / second ResEncoder undefined -> stand-ins.
    img_g = img.mean(axis=(2, 3))                                     # (B, 3)
    feat_g = img_g @ params["im_enc_w"]                               # (B, 512)
    feat_g2 = (img_g @ params["im_enc2_gw"]).reshape(B, -1)           # (B, 512)
    feat_l2 = jnp.einsum("bchw,cf->bfhw", img, params["im_enc2_lw"])  # (B, 64, H, W)

    # TODO(synk): M.TreeGraphDecoder undefined -> stand-in point decoder.
    pc = jnp.tanh(feat_g @ params["pt_dec_w"]).reshape(B, N_PC, 3) * 0.5

    # Fused Pallas head: PointMLP stand-in + channel max + spatial_transformer
    # + create_occ + VoxelEncoder2 stand-in, all in one kernel.
    trans_pred, vox_feat0 = fused_head(pc, feat_g2, params)
    if trans_mat is None:
        trans_mat = trans_pred                                        # (B, 4, 3)
    vox_feat = (vox_feat0,)                                           # (B, 32)

    # query[:, :, [2,1,0]] * 2 — trivial lane permutation, left to XLA fusion.
    q = query[:, :, ::-1] * 2.0                                       # (B, N, 3)

    # TODO(synk): M.PerceptualPooling undefined -> stand-in projection pooling.
    ones = jnp.ones((B, N, 1), q.dtype)
    proj = jnp.einsum("bnk,bkc->bnc", jnp.concatenate([q, ones], -1), trans_mat)
    feat_local = jnp.einsum("bnc,cf->bfn", proj, params["percep_w"])
    feat_local = feat_local + feat_l2.mean(axis=(2, 3))[:, :, None]
    feat_local_perceptual = feat_local.reshape(B, -1, N)              # (B, 64, N)

    # TODO(synk): M.VoxelDecoder2 (sdf_decoder) undefined -> stand-in MLP head.
    per_pt = jnp.concatenate(
        [q,
         jnp.broadcast_to(vox_feat0[:, None, :], (B, N, vox_feat0.shape[-1])),
         jnp.transpose(feat_local_perceptual, (0, 2, 1)),
         jnp.broadcast_to(grass_80d[:, None, :], (B, N, grass_80d.shape[-1]))],
        axis=-1)
    h = jnp.maximum(per_pt @ params["sdf_w1"] + params["sdf_b1"], 0.0)
    sdf = h @ params["sdf_w2"] + params["sdf_b2"]                     # (B, N, 1)

    return vox_feat[0], sdf


# ================================ main ===================================== #
if __name__ == "__main__":
    key = jax.random.PRNGKey(0)
    k_img, k_q, k_g, k_p = jax.random.split(key, 4)

    img = jax.random.normal(k_img, (BATCH, 3, H, W), jnp.float32)
    query = jax.random.uniform(k_q, (BATCH, NUM_POINTS, 3), jnp.float32,
                               minval=BB_MIN, maxval=BB_MAX)
    grass_data_80d = jax.random.normal(k_g, (BATCH, 80), jnp.float32)
    params = init_params(k_p)

    fwd = jax.jit(lihs_forward)
    vox_feat0, sdf = fwd(img, query, grass_data_80d, params)
    jax.block_until_ready((vox_feat0, sdf))

    assert vox_feat0.shape == (BATCH, 32)
    assert sdf.shape == (BATCH, NUM_POINTS, 1)
    assert bool(jnp.all(jnp.isfinite(vox_feat0))) and bool(jnp.all(jnp.isfinite(sdf)))
    print("KERNEL_OK")
</pallas_src>

<mosaic_0001>
module attributes {stable_mosaic.version = 11 : i64} {
  func.func @_fused_head_kernel(%arg0: i32, %arg1: memref<8x3x64xf32, #tpu.memory_space<vmem>>, %arg2: memref<8x512xbf16, #tpu.memory_space<vmem>>, %arg3: memref<512x128xbf16, #tpu.memory_space<vmem>>, %arg4: memref<3x128x128xbf16, #tpu.memory_space<vmem>>, %arg5: memref<6x128xf32, #tpu.memory_space<vmem>>, %arg6: memref<64x128xbf16, #tpu.memory_space<vmem>>, %arg7: memref<8x128xf32, #tpu.memory_space<vmem>>, %arg8: memref<8x128xf32, #tpu.memory_space<vmem>>) attributes {dimension_semantics = [#tpu.dimension_semantics<parallel>], iteration_bounds = array<i64: 1>, scalar_prefetch = 0 : i64, scratch_operands = 0 : i64, tpu.core_type = #tpu.core_type<tc>, window_params = [{transform_indices = @transform_0, window_bounds = array<i64: 8, 3, 64>}, {transform_indices = @transform_1, window_bounds = array<i64: 8, 512>}, {pipeline_mode = #tpu.pipeline_mode<synchronous>, transform_indices = @transform_2, window_bounds = array<i64: 512, 128>}, {pipeline_mode = #tpu.pipeline_mode<synchronous>, transform_indices = @transform_3, window_bounds = array<i64: 3, 128, 128>}, {pipeline_mode = #tpu.pipeline_mode<synchronous>, transform_indices = @transform_4, window_bounds = array<i64: 6, 128>}, {pipeline_mode = #tpu.pipeline_mode<synchronous>, transform_indices = @transform_5, window_bounds = array<i64: 64, 128>}, {transform_indices = @transform_6, window_bounds = array<i64: 8, 128>}, {transform_indices = @transform_7, window_bounds = array<i64: 8, 128>}]} {
    %c0 = arith.constant 0 : index
    %c0_0 = arith.constant 0 : index
    %c0_1 = arith.constant 0 : index
    %0 = vector.load %arg1[%c0, %c0_0, %c0_1] : memref<8x3x64xf32, #tpu.memory_space<vmem>>, vector<8x3x64xf32>
    %c0_2 = arith.constant 0 : index
    %c0_3 = arith.constant 0 : index
    %1 = vector.load %arg5[%c0_2, %c0_3] : memref<6x128xf32, #tpu.memory_space<vmem>>, vector<6x128xf32>
    %2 = vector.extract_strided_slice %0 {offsets = [0, 0, 0], sizes = [8, 1, 64], strides = [1, 1, 1]} : vector<8x3x64xf32> to vector<8x1x64xf32>
    %3 = vector.shape_cast %2 : vector<8x1x64xf32> to vector<8x64xf32>
    %4 = vector.shape_cast %3 : vector<8x64xf32> to vector<8x64x1xf32>
    %5 = vector.extract_strided_slice %1 {offsets = [0, 0], sizes = [1, 128], strides = [1, 1]} : vector<6x128xf32> to vector<1x128xf32>
    %6 = vector.shape_cast %5 : vector<1x128xf32> to vector<128xf32>
    %7 = vector.shape_cast %6 : vector<128xf32> to vector<1x1x128xf32>
    %8 = vector.broadcast %4 : vector<8x64x1xf32> to vector<8x64x128xf32>
    %9 = vector.broadcast %7 : vector<1x1x128xf32> to vector<8x64x128xf32>
    %10 = arith.mulf %8, %9 : vector<8x64x128xf32>
    %11 = vector.extract_strided_slice %0 {offsets = [0, 1, 0], sizes = [8, 1, 64], strides = [1, 1, 1]} : vector<8x3x64xf32> to vector<8x1x64xf32>
    %12 = vector.shape_cast %11 : vector<8x1x64xf32> to vector<8x64xf32>
    %13 = vector.shape_cast %12 : vector<8x64xf32> to vector<8x64x1xf32>
    %14 = vector.extract_strided_slice %1 {offsets = [1, 0], sizes = [1, 128], strides = [1, 1]} : vector<6x128xf32> to vector<1x128xf32>
    %15 = vector.shape_cast %14 : vector<1x128xf32> to vector<128xf32>
    %16 = vector.shape_cast %15 : vector<128xf32> to vector<1x1x128xf32>
    %17 = vector.broadcast %13 : vector<8x64x1xf32> to vector<8x64x128xf32>
    %18 = vector.broadcast %16 : vector<1x1x128xf32> to vector<8x64x128xf32>
    %19 = arith.mulf %17, %18 : vector<8x64x128xf32>
    %20 = arith.addf %10, %19 : vector<8x64x128xf32>
    %21 = vector.extract_strided_slice %0 {offsets = [0, 2, 0], sizes = [8, 1, 64], strides = [1, 1, 1]} : vector<8x3x64xf32> to vector<8x1x64xf32>
    %22 = vector.shape_cast %21 : vector<8x1x64xf32> to vector<8x64xf32>
    %23 = vector.shape_cast %22 : vector<8x64xf32> to vector<8x64x1xf32>
    %24 = vector.extract_strided_slice %1 {offsets = [2, 0], sizes = [1, 128], strides = [1, 1]} : vector<6x128xf32> to vector<1x128xf32>
    %25 = vector.shape_cast %24 : vector<1x128xf32> to vector<128xf32>
    %26 = vector.shape_cast %25 : vector<128xf32> to vector<1x1x128xf32>
    %27 = vector.broadcast %23 : vector<8x64x1xf32> to vector<8x64x128xf32>
    %28 = vector.broadcast %26 : vector<1x1x128xf32> to vector<8x64x128xf32>
    %29 = arith.mulf %27, %28 : vector<8x64x128xf32>
    %30 = arith.addf %20, %29 : vector<8x64x128xf32>
    %cst = arith.constant dense<0xFF800000> : vector<8x128xf32>
    %31 = vector.multi_reduction <maximumf>, %30, %cst [1] : vector<8x64x128xf32> to vector<8x128xf32>
    %32 = vector.extract_strided_slice %1 {offsets = [3, 0], sizes = [1, 128], strides = [1, 1]} : vector<6x128xf32> to vector<1x128xf32>
    %33 = vector.shape_cast %32 : vector<1x128xf32> to vector<128xf32>
    %34 = vector.shape_cast %33 : vector<128xf32> to vector<1x128xf32>
    %35 = vector.extract_strided_slice %1 {offsets = [4, 0], sizes = [1, 128], strides = [1, 1]} : vector<6x128xf32> to vector<1x128xf32>
    %36 = vector.shape_cast %35 : vector<1x128xf32> to vector<128xf32>
    %37 = vector.shape_cast %36 : vector<128xf32> to vector<1x128xf32>
    %38 = vector.extract_strided_slice %1 {offsets = [5, 0], sizes = [1, 128], strides = [1, 1]} : vector<6x128xf32> to vector<1x128xf32>
    %39 = vector.shape_cast %38 : vector<1x128xf32> to vector<128xf32>
    %40 = vector.shape_cast %39 : vector<128xf32> to vector<1x128xf32>
    %41 = arith.truncf %31 : vector<8x128xf32> to vector<8x128xbf16>
    %c0_4 = arith.constant 0 : index
    %c0_5 = arith.constant 0 : index
    %c0_6 = arith.constant 0 : index
    %42 = vector.load %arg4[%c0_4, %c0_5, %c0_6] : memref<3x128x128xbf16, #tpu.memory_space<vmem>>, vector<1x128x128xbf16>
    %43 = vector.shape_cast %42 : vector<1x128x128xbf16> to vector<128x128xbf16>
    %cst_7 = arith.constant dense<0.000000e+00> : vector<8x128xf32>
    %44 = tpu.matmul %41, %43, %cst_7 {dimension_numbers = #tpu.dot_dimension_numbers<[1], [0], [0], [1], [0, 0, 1, 1], [], []>} : vector<8x128xbf16>, vector<128x128xbf16>, vector<8x128xf32> -> vector<8x128xf32>
    %c0_8 = arith.constant 0 : index
    %c0_9 = arith.constant 0 : index
    %45 = vector.load %arg2[%c0_8, %c0_9] : memref<8x512xbf16, #tpu.memory_space<vmem>>, vector<8x512xbf16>
    %c0_10 = arith.constant 0 : index
    %c0_11 = arith.constant 0 : index
    %46 = vector.load %arg3[%c0_10, %c0_11] : memref<512x128xbf16, #tpu.memory_space<vmem>>, vector<512x128xbf16>
    %cst_12 = arith.constant dense<0.000000e+00> : vector<8x128xf32>
    %47 = tpu.matmul %45, %46, %cst_12 {dimension_numbers = #tpu.dot_dimension_numbers<[1], [0], [0], [1], [0, 0, 1, 1], [], []>} : vector<8x512xbf16>, vector<512x128xbf16>, vector<8x128xf32> -> vector<8x128xf32>
    %48 = arith.addf %44, %47 : vector<8x128xf32>
    %49 = vector.broadcast %34 : vector<1x128xf32> to vector<8x128xf32>
    %50 = arith.addf %48, %49 : vector<8x128xf32>
    %cst_13 = arith.constant 0.000000e+00 : f32
    %51 = vector.broadcast %cst_13 : f32 to vector<8x128xf32>
    %52 = arith.cmpf ogt, %50, %51 : vector<8x128xf32>
    %cst_14 = arith.constant 2.000000e-01 : f32
    %53 = vector.broadcast %cst_14 : f32 to vector<8x128xf32>
    %54 = arith.mulf %53, %50 : vector<8x128xf32>
    %55 = arith.select %52, %50, %54 : vector<8x128xi1>, vector<8x128xf32>
    %56 = arith.truncf %55 : vector<8x128xf32> to vector<8x128xbf16>
    %c1 = arith.constant 1 : index
    %c0_15 = arith.constant 0 : index
    %c0_16 = arith.constant 0 : index
    %57 = vector.load %arg4[%c1, %c0_15, %c0_16] : memref<3x128x128xbf16, #tpu.memory_space<vmem>>, vector<1x128x128xbf16>
    %58 = vector.shape_cast %57 : vector<1x128x128xbf16> to vector<128x128xbf16>
    %cst_17 = arith.constant dense<0.000000e+00> : vector<8x128xf32>
    %59 = tpu.matmul %56, %58, %cst_17 {dimension_numbers = #tpu.dot_dimension_numbers<[1], [0], [0], [1], [0, 0, 1, 1], [], []>} : vector<8x128xbf16>, vector<128x128xbf16>, vector<8x128xf32> -> vector<8x128xf32>
    %60 = vector.broadcast %37 : vector<1x128xf32> to vector<8x128xf32>
    %61 = arith.addf %59, %60 : vector<8x128xf32>
    %cst_18 = arith.constant 0.000000e+00 : f32
    %62 = vector.broadcast %cst_18 : f32 to vector<8x128xf32>
    %63 = arith.cmpf ogt, %61, %62 : vector<8x128xf32>
    %cst_19 = arith.constant 2.000000e-01 : f32
    %64 = vector.broadcast %cst_19 : f32 to vector<8x128xf32>
    %65 = arith.mulf %64, %61 : vector<8x128xf32>
    %66 = arith.select %63, %61, %65 : vector<8x128xi1>, vector<8x128xf32>
    %67 = arith.truncf %66 : vector<8x128xf32> to vector<8x128xbf16>
    %c2 = arith.constant 2 : index
    %c0_20 = arith.constant 0 : index
    %c0_21 = arith.constant 0 : index
    %68 = vector.load %arg4[%c2, %c0_20, %c0_21] : memref<3x128x128xbf16, #tpu.memory_space<vmem>>, vector<1x128x128xbf16>
    %69 = vector.shape_cast %68 : vector<1x128x128xbf16> to vector<128x128xbf16>
    %cst_22 = arith.constant dense<0.000000e+00> : vector<8x128xf32>
    %70 = tpu.matmul %67, %69, %cst_22 {dimension_numbers = #tpu.dot_dimension_numbers<[1], [0], [0], [1], [0, 0, 1, 1], [], []>} : vector<8x128xbf16>, vector<128x128xbf16>, vector<8x128xf32> -> vector<8x128xf32>
    %71 = vector.broadcast %40 : vector<1x128xf32> to vector<8x128xf32>
    %72 = arith.addf %70, %71 : vector<8x128xf32>
    %c0_23 = arith.constant 0 : index
    %c0_24 = arith.constant 0 : index
    %73 = vector.load %arg7[%c0_23, %c0_24] : memref<8x128xf32, #tpu.memory_space<vmem>>, vector<8x128xf32>
    tpu.vector_store %arg7[%c0_23, %c0_24], %72 {strides = array<i32>} : memref<8x128xf32, #tpu.memory_space<vmem>>, vector<8x128xf32>,
    %74 = vector.extract_strided_slice %0 {offsets = [0, 0, 0], sizes = [8, 1, 64], strides = [1, 1, 1]} : vector<8x3x64xf32> to vector<8x1x64xf32>
    %75 = vector.shape_cast %74 : vector<8x1x64xf32> to vector<8x64xf32>
    %cst_25 = arith.constant -5.000000e-01 : f32
    %76 = vector.broadcast %cst_25 : f32 to vector<8x64xf32>
    %77 = arith.subf %75, %76 : vector<8x64xf32>
    %cst_26 = arith.constant 0.333333343 : f32
    %78 = vector.broadcast %cst_26 : f32 to vector<8x64xf32>
    %79 = arith.divf %77, %78 : vector<8x64xf32>
    %cst_27 = arith.constant 5.000000e-01 : f32
    %80 = vector.broadcast %cst_27 : f32 to vector<8x64xf32>
    %81 = arith.addf %79, %80 : vector<8x64xf32>
    %82 = math.floor %81 : vector<8x64xf32>
    %cst_28 = arith.constant 0.000000e+00 : f32
    %cst_29 = arith.constant 3.000000e+00 : f32
    %83 = vector.broadcast %cst_28 : f32 to vector<8x64xf32>
    %84 = arith.maximumf %83, %82 : vector<8x64xf32>
    %85 = vector.broadcast %cst_29 : f32 to vector<8x64xf32>
    %86 = arith.minimumf %85, %84 : vector<8x64xf32>
    %87 = arith.fptosi %86 : vector<8x64xf32> to vector<8x64xi32>
    %c16_i32 = arith.constant 16 : i32
    %88 = vector.broadcast %c16_i32 : i32 to vector<8x64xi32>
    %89 = arith.muli %87, %88 : vector<8x64xi32>
    %90 = vector.extract_strided_slice %0 {offsets = [0, 1, 0], sizes = [8, 1, 64], strides = [1, 1, 1]} : vector<8x3x64xf32> to vector<8x1x64xf32>
    %91 = vector.shape_cast %90 : vector<8x1x64xf32> to vector<8x64xf32>
    %cst_30 = arith.constant -5.000000e-01 : f32
    %92 = vector.broadcast %cst_30 : f32 to vector<8x64xf32>
    %93 = arith.subf %91, %92 : vector<8x64xf32>
    %cst_31 = arith.constant 0.333333343 : f32
    %94 = vector.broadcast %cst_31 : f32 to vector<8x64xf32>
    %95 = arith.divf %93, %94 : vector<8x64xf32>
    %cst_32 = arith.constant 5.000000e-01 : f32
    %96 = vector.broadcast %cst_32 : f32 to vector<8x64xf32>
    %97 = arith.addf %95, %96 : vector<8x64xf32>
    %98 = math.floor %97 : vector<8x64xf32>
    %cst_33 = arith.constant 0.000000e+00 : f32
    %cst_34 = arith.constant 3.000000e+00 : f32
    %99 = vector.broadcast %cst_33 : f32 to vector<8x64xf32>
    %100 = arith.maximumf %99, %98 : vector<8x64xf32>
    %101 = vector.broadcast %cst_34 : f32 to vector<8x64xf32>
    %102 = arith.minimumf %101, %100 : vector<8x64xf32>
    %103 = arith.fptosi %102 : vector<8x64xf32> to vector<8x64xi32>
    %c4_i32 = arith.constant 4 : i32
    %104 = vector.broadcast %c4_i32 : i32 to vector<8x64xi32>
    %105 = arith.muli %103, %104 : vector<8x64xi32>
    %106 = arith.addi %89, %105 : vector<8x64xi32>
    %107 = vector.extract_strided_slice %0 {offsets = [0, 2, 0], sizes = [8, 1, 64], strides = [1, 1, 1]} : vector<8x3x64xf32> to vector<8x1x64xf32>
    %108 = vector.shape_cast %107 : vector<8x1x64xf32> to vector<8x64xf32>
    %cst_35 = arith.constant -5.000000e-01 : f32
    %109 = vector.broadcast %cst_35 : f32 to vector<8x64xf32>
    %110 = arith.subf %108, %109 : vector<8x64xf32>
    %cst_36 = arith.constant 0.333333343 : f32
    %111 = vector.broadcast %cst_36 : f32 to vector<8x64xf32>
    %112 = arith.divf %110, %111 : vector<8x64xf32>
    %cst_37 = arith.constant 5.000000e-01 : f32
    %113 = vector.broadcast %cst_37 : f32 to vector<8x64xf32>
    %114 = arith.addf %112, %113 : vector<8x64xf32>
    %115 = math.floor %114 : vector<8x64xf32>
    %cst_38 = arith.constant 0.000000e+00 : f32
    %cst_39 = arith.constant 3.000000e+00 : f32
    %116 = vector.broadcast %cst_38 : f32 to vector<8x64xf32>
    %117 = arith.maximumf %116, %115 : vector<8x64xf32>
    %118 = vector.broadcast %cst_39 : f32 to vector<8x64xf32>
    %119 = arith.minimumf %118, %117 : vector<8x64xf32>
    %120 = arith.fptosi %119 : vector<8x64xf32> to vector<8x64xi32>
    %121 = arith.addi %106, %120 : vector<8x64xi32>
    %122 = tpu.iota {dimensions = array<i32: 2>} : vector<8x64x64xi32>
    %123 = vector.shape_cast %121 : vector<8x64xi32> to vector<8x64x1xi32>
    %124 = vector.broadcast %123 : vector<8x64x1xi32> to vector<8x64x64xi32>
    %125 = arith.cmpi eq, %122, %124 : vector<8x64x64xi32>
    %126 = arith.extui %125 : vector<8x64x64xi1> to vector<8x64x64xi32>
    %127 = arith.sitofp %126 : vector<8x64x64xi32> to vector<8x64x64xf32>
    %cst_40 = arith.constant dense<0xFF800000> : vector<8x64xf32>
    %128 = vector.multi_reduction <maximumf>, %127, %cst_40 [1] : vector<8x64x64xf32> to vector<8x64xf32>
    %129 = arith.truncf %128 : vector<8x64xf32> to vector<8x64xbf16>
    %c0_41 = arith.constant 0 : index
    %c0_42 = arith.constant 0 : index
    %130 = vector.load %arg6[%c0_41, %c0_42] : memref<64x128xbf16, #tpu.memory_space<vmem>>, vector<64x128xbf16>
    %cst_43 = arith.constant dense<0.000000e+00> : vector<8x128xf32>
    %131 = tpu.matmul %129, %130, %cst_43 {dimension_numbers = #tpu.dot_dimension_numbers<[1], [0], [0], [1], [0, 0, 1, 1], [], []>} : vector<8x64xbf16>, vector<64x128xbf16>, vector<8x128xf32> -> vector<8x128xf32>
    %c0_44 = arith.constant 0 : index
    %c0_45 = arith.constant 0 : index
    %132 = vector.load %arg8[%c0_44, %c0_45] : memref<8x128xf32, #tpu.memory_space<vmem>>, vector<8x128xf32>
    tpu.vector_store %arg8[%c0_44, %c0_45], %131 {strides = array<i32>} : memref<8x128xf32, #tpu.memory_space<vmem>>, vector<8x128xf32>,
    return
  }
  func.func @transform_0(%arg0: i32) -> (i32, i32, i32) {
    %c0_i32 = arith.constant 0 : i32
    %c0_i32_0 = arith.constant 0 : i32
    %c0_i32_1 = arith.constant 0 : i32
    return %arg0, %c0_i32, %c0_i32_0 : i32, i32, i32
  }
  func.func @transform_1(%arg0: i32) -> (i32, i32) {
    %c0_i32 = arith.constant 0 : i32
    %c0_i32_0 = arith.constant 0 : i32
    return %arg0, %c0_i32 : i32, i32
  }
  func.func @transform_2(%arg0: i32) -> (i32, i32) {
    %c0_i32 = arith.constant 0 : i32
    %c0_i32_0 = arith.constant 0 : i32
    %c0_i32_1 = arith.constant 0 : i32
    return %c0_i32, %c0_i32_0 : i32, i32
  }
  func.func @transform_3(%arg0: i32) -> (i32, i32, i32) {
    %c0_i32 = arith.constant 0 : i32
    %c0_i32_0 = arith.constant 0 : i32
    %c0_i32_1 = arith.constant 0 : i32
    %c0_i32_2 = arith.constant 0 : i32
    return %c0_i32, %c0_i32_0, %c0_i32_1 : i32, i32, i32
  }
  func.func @transform_4(%arg0: i32) -> (i32, i32) {
    %c0_i32 = arith.constant 0 : i32
    %c0_i32_0 = arith.constant 0 : i32
    %c0_i32_1 = arith.constant 0 : i32
    return %c0_i32, %c0_i32_0 : i32, i32
  }
  func.func @transform_5(%arg0: i32) -> (i32, i32) {
    %c0_i32 = arith.constant 0 : i32
    %c0_i32_0 = arith.constant 0 : i32
    %c0_i32_1 = arith.constant 0 : i32
    return %c0_i32, %c0_i32_0 : i32, i32
  }
  func.func @transform_6(%arg0: i32) -> (i32, i32) {
    %c0_i32 = arith.constant 0 : i32
    %c0_i32_0 = arith.constant 0 : i32
    return %arg0, %c0_i32 : i32, i32
  }
  func.func @transform_7(%arg0: i32) -> (i32, i32) {
    %c0_i32 = arith.constant 0 : i32
    %c0_i32_0 = arith.constant 0 : i32
    return %arg0, %c0_i32 : i32, i32
  }
}

</mosaic_0001>

<bundles_post_ra>
// kernel: lihs_forward.1
= control target key start
LH: loop header
LB: loop body
LE: loop exit
PB: predicated region body
PF: predicated region fallthrough
CT: control target
= control target key end

     0   :  { %v5091_v0 = vlaneseq  ;;  %vm3312_vm0 = vmmov 0   ;;  %vm1703_vm1 = vcmask 1041409   ;;  %vm1705_vm2 = vcmask 1042434   ;;  %s5083_s0 = inlined_call_operand.vmem [shape: f32[8,3,64], index: 0, kind: input, shape index: {}]   ;;  %s5084_s4 = inlined_call_operand.vmem [shape: f32[6,128], index: 4, kind: input, shape index: {}]   ;;  %s5085_s2 = inlined_call_operand.vmem [shape: bf16[512,128], index: 2, kind: input, shape index: {}]   ;;  %s5086_s1 = inlined_call_operand.vmem [shape: bf16[8,512], index: 1, kind: input, shape index: {}]   ;;  %s5087_s3 = inlined_call_operand.vmem [shape: bf16[3,128,128], index: 3, kind: input, shape index: {}]   ;;  %s5088_s5 = inlined_call_operand.vmem [shape: bf16[64,128], index: 5, kind: input, shape index: {}]   ;;  %s5089_s7 = inlined_call_operand.vmem [shape: f32[8,128], index: 7, kind: output, shape index: {1}]   ;;  %s5090_s6 = inlined_call_operand.vmem [shape: f32[8,128], index: 6, kind: output, shape index: {0}]  }
   0x1   :  { %v27_v2 = vld [vmem:[%s5083_s0 + $0x4] sm:$0x7]  ;;  %v26_v3 = vld [vmem:[%s5083_s0] sm:$0x7]  ;;  %v31_v8 = vld [vmem:[%s5083_s0 + $0x14] sm:$0x7] }
   0x2   :  { %v3354_v1 = vshrl.u32 %v5091_v0, 7  ;;  %v3390_v11 = vld [vmem:[%s5083_s0 + $0x18] sm:$0x7]  ;;  %v3399_v13 = vld [vmem:[%s5083_s0 + $0x1c] sm:$0x7]  ;;  %vm1707_vm3 = vcmask 1043459  }
   0x3   :  { %v28_v16 = vld [vmem:[%s5083_s0 + $0x8] sm:$0x7]  ;;  %v29_v21 = vld [vmem:[%s5083_s0 + $0xc] sm:$0x7]  ;;  %v30_v27 = vld [vmem:[%s5083_s0 + $0x10] sm:$0x7] }
   0x4   :  { %5099 = vst [vmem:[#allocation2_spill] sm:$0xff] %v3354_v1  ;;  %v3363_v4 = vsub.s32 0, %v3354_v1  ;;  %v3374_v7 = vsub.s32 1, %v3354_v1  ;;  %v3419_v18 = vsub.s32 2, %v3354_v1  ;;  %v34_v53 = vld [vmem:[%s5084_s4] sm:$0x3f] }
   0x5   :  { %vm1709_vm4 = vcmask 1044484   ;;  %vm1711_vm5 = vcmask 1045509   ;;  %vm1713_vm6 = vcmask 1046534   ;;  %vm1715_vm7 = vcmask 1047559  }
   0x6   :  { %5100 = vst [vmem:[#allocation3_spill] sm:$0xff] %v3363_v4  ;;  %v3366_v5 = vrot.slane %v27_v2, %v3363_v4  ;;  %v3369_v6 = vrot.slane %v26_v3, %v3363_v4  ;;  %v3382_v9 = vrot.slane %v26_v3, %v3374_v7  ;;  %v3385_v10 = vrot.slane %v31_v8, %v3374_v7 }
   0x7   :  { %v3394_v12 = vrot.slane %v3390_v11, %v3374_v7  ;;  %v3403_v14 = vrot.slane %v3399_v13, %v3374_v7  ;;  %v3408_v15 = vrot.slane %v27_v2, %v3374_v7  ;;  %v3416_v17 = vrot.slane %v28_v16, %v3363_v4 }
   0x8   :  { %75 = vbcast.lane.b32.xlu1 %v3366_v5, 256  ;;  %40 = vbcast.lane.b32.xlu0 %v3369_v6, 256  ;;  %v3422_v19 = vrot.slane %v31_v8, %v3419_v18  ;;  %v3427_v20 = vrot.slane %v28_v16, %v3374_v7  ;;  %v3437_v22 = vrot.slane %v29_v21, %v3363_v4  ;;  %vm2618_vm8 = vcmask 523264  }
   0x9   :  { %v3444_v23 = vrot.slane %v29_v21, %v3374_v7  ;;  %v3448_v24 = vrot.slane %v3390_v11, %v3419_v18  ;;  %v3453_v25 = vrot.slane %v26_v3, %v3419_v18  ;;  %v3458_v26 = vrot.slane %v27_v2, %v3419_v18 }
   0xa   :  { %v3466_v28 = vrot.slane %v30_v27, %v3363_v4  ;;  %v3473_v29 = vrot.slane %v30_v27, %v3374_v7  ;;  %v3478_v30 = vrot.slane %v28_v16, %v3419_v18  ;;  %v3485_v31 = vrot.slane %v31_v8, %v3363_v4 }
   0xb   :  { %v3489_v32 = vrot.slane %v3399_v13, %v3419_v18  ;;  %v3502_v33 = vrot.slane %v29_v21, %v3419_v18  ;;  %v3510_v34 = vrot.slane %v3390_v11, %v3363_v4  ;;  %v3519_v35 = vrot.slane %v30_v27, %v3419_v18 }
   0xc   :  { %79 = vbcast.lane.b32.xlu1 %v3366_v5, 264  ;;  %44 = vbcast.lane.b32.xlu0 %v3369_v6, 264  ;;  %v3529_v38 = vrot.slane %v3399_v13, %v3363_v4  ;;  %v3565_v54 = vrot.slane %v34_v53, %v3374_v7  ;;  %v3574_v57 = vrot.slane %v34_v53, %v3363_v4 }
   0xd   :  { %v3582_v61 = vrot.slane %v34_v53, %v3419_v18 }
  0x10   :  { %392 = vbcast.lane.b32.xlu1 %v3382_v9, 264  ;;  %388 = vbcast.lane.b32.xlu0 %v3382_v9, 256 }
  0x14   :  { %427 = vbcast.lane.b32.xlu1 %v3408_v15, 264  ;;  %423 = vbcast.lane.b32.xlu0 %v3408_v15, 256 }
  0x18   :  { %114 = vbcast.lane.b32.xlu1 %v3416_v17, 264  ;;  %110 = vbcast.lane.b32.xlu0 %v3416_v17, 256 }
  0x1c   :  { %462 = vbcast.lane.b32.xlu1 %v3427_v20, 264  ;;  %458 = vbcast.lane.b32.xlu0 %v3427_v20, 256 }
  0x20   :  { %83 = vbcast.lane.b32.xlu1 %v3366_v5, 272  ;;  %48 = vbcast.lane.b32.xlu0 %v3369_v6, 272 }
  0x24   :  { %149 = vbcast.lane.b32.xlu1 %v3437_v22, 264  ;;  %145 = vbcast.lane.b32.xlu0 %v3437_v22, 256 }
  0x28   :  { %431 = vbcast.lane.b32.xlu1 %v3408_v15, 272  ;;  %396 = vbcast.lane.b32.xlu0 %v3382_v9, 272 }
  0x2c   :  { %497 = vbcast.lane.b32.xlu1 %v3444_v23, 264  ;;  %493 = vbcast.lane.b32.xlu0 %v3444_v23, 256 }
  0x30   :  { %804 = vbcast.lane.b32.xlu1 %v3453_v25, 264  ;;  %800 = vbcast.lane.b32.xlu0 %v3453_v25, 256 }
  0x34   :  { %839 = vbcast.lane.b32.xlu1 %v3458_v26, 264  ;;  %835 = vbcast.lane.b32.xlu0 %v3458_v26, 256 }
  0x38   :  { %180 = vbcast.lane.b32.xlu1 %v3466_v28, 256  ;;  %118 = vbcast.lane.b32.xlu0 %v3416_v17, 272 }
  0x3c   :  { %466 = vbcast.lane.b32.xlu1 %v3427_v20, 272  ;;  %184 = vbcast.lane.b32.xlu0 %v3466_v28, 264 }
  0x40   :  { %532 = vbcast.lane.b32.xlu1 %v3473_v29, 264  ;;  %528 = vbcast.lane.b32.xlu0 %v3473_v29, 256 }
  0x44   :  { %874 = vbcast.lane.b32.xlu1 %v3478_v30, 264  ;;  %870 = vbcast.lane.b32.xlu0 %v3478_v30, 256 }
  0x48   :  { %87 = vbcast.lane.b32.xlu1 %v3366_v5, 280  ;;  %52 = vbcast.lane.b32.xlu0 %v3369_v6, 280 }
  0x4c   :  { %215 = vbcast.lane.b32.xlu1 %v3485_v31, 256  ;;  %153 = vbcast.lane.b32.xlu0 %v3437_v22, 272 }
  0x50   :  { %400 = vbcast.lane.b32.xlu1 %v3382_v9, 280  ;;  %219 = vbcast.lane.b32.xlu0 %v3485_v31, 264 }
  0x54   :  { %501 = vbcast.lane.b32.xlu1 %v3444_v23, 272  ;;  %435 = vbcast.lane.b32.xlu0 %v3408_v15, 280 }
  0x58   :  { %567 = vbcast.lane.b32.xlu1 %v3385_v10, 264  ;;  %563 = vbcast.lane.b32.xlu0 %v3385_v10, 256 }
  0x5c   :  { %843 = vbcast.lane.b32.xlu1 %v3458_v26, 272  ;;  %808 = vbcast.lane.b32.xlu0 %v3453_v25, 272 }
  0x60   :  { %909 = vbcast.lane.b32.xlu1 %v3502_v33, 264  ;;  %905 = vbcast.lane.b32.xlu0 %v3502_v33, 256 }
  0x64   :  { %188 = vbcast.lane.b32.xlu1 %v3466_v28, 272  ;;  %122 = vbcast.lane.b32.xlu0 %v3416_v17, 280 }
  0x68   :  { %254 = vbcast.lane.b32.xlu1 %v3510_v34, 264  ;;  %250 = vbcast.lane.b32.xlu0 %v3510_v34, 256 }
  0x6c   :  { %536 = vbcast.lane.b32.xlu1 %v3473_v29, 272  ;;  %470 = vbcast.lane.b32.xlu0 %v3427_v20, 280 }
  0x70   :  { %602 = vbcast.lane.b32.xlu1 %v3394_v12, 264  ;;  %598 = vbcast.lane.b32.xlu0 %v3394_v12, 256 }
  0x74   :  { %940 = vbcast.lane.b32.xlu1 %v3519_v35, 256  ;;  %878 = vbcast.lane.b32.xlu0 %v3478_v30, 272 }
  0x78   :  { %56 = vbcast.lane.b32.xlu1 %v3369_v6, 288  ;;  %944 = vbcast.lane.b32.xlu0 %v3519_v35, 264 }
  0x7a   :  { %v76_v36 = vpop.permute.xlu1 %75  ;;  %v41_v37 = vpop.permute.xlu0 %40 }
  0x7b   :  { %v319_v2 = vmul.f32 %v3574_v57, %v41_v37  ;;  %v327_v37 = vmul.f32 %v3574_v57, %v76_v36 }
  0x7c   :  { %157 = vbcast.lane.b32.xlu1 %v3437_v22, 280  ;;  %91 = vbcast.lane.b32.xlu0 %v3366_v5, 288 }
  0x7e   :  { %v80_v39 = vpop.permute.xlu1 %79  ;;  %v45_v40 = vpop.permute.xlu0 %44 }
  0x7f   :  { %v320_v63 = vmul.f32 %v3574_v57, %v45_v40  ;;  %v328_v27 = vmul.f32 %v3574_v57, %v80_v39 }
  0x80   :  { %285 = vbcast.lane.b32.xlu1 %v3529_v38, 256  ;;  %223 = vbcast.lane.b32.xlu0 %v3485_v31, 272 }
  0x82   :  { %v393_v41 = vpop.permute.xlu1 %392  ;;  %v389_v42 = vpop.permute.xlu0 %388 }
  0x83   :  { %v668_v58 = vmul.f32 %v3565_v54, %v393_v41  ;;  %v667_v62 = vmul.f32 %v3565_v54, %v389_v42 }
  0x84   :  { %404 = vbcast.lane.b32.xlu1 %v3382_v9, 288  ;;  %289 = vbcast.lane.b32.xlu0 %v3529_v38, 264 }
  0x85   :  { %v732_v3 = vadd.f32 %v668_v58, %v320_v63  ;;  %v731_v13 = vadd.f32 %v667_v62, %v319_v2 }
  0x86   :  { %v428_v43 = vpop.permute.xlu1 %427  ;;  %v424_v44 = vpop.permute.xlu0 %423 }
  0x87   :  { %v676_v7 = vmul.f32 %v3565_v54, %v428_v43  ;;  %v675_v16 = vmul.f32 %v3565_v54, %v424_v44 }
  0x88   :  { %505 = vbcast.lane.b32.xlu1 %v3444_v23, 280  ;;  %439 = vbcast.lane.b32.xlu0 %v3408_v15, 288 }
  0x89   :  { %v740_v42 = vadd.f32 %v676_v7, %v328_v27  ;;  %v739_v44 = vadd.f32 %v675_v16, %v327_v37 }
  0x8a   :  { %v3537_v45 = vpop.permute.xlu1 %114  ;;  %v3539_v46 = vpop.permute.xlu0 %110 }
  0x8b   :  { %v336_v27 = vmul.f32 %v3574_v57, %v3537_v45  ;;  %v335_v37 = vmul.f32 %v3574_v57, %v3539_v46 }
  0x8c   :  { %633 = vbcast.lane.b32.xlu1 %v3403_v14, 256  ;;  %571 = vbcast.lane.b32.xlu0 %v3385_v10, 272 }
  0x8e   :  { %v3543_v47 = vpop.permute.xlu1 %462  ;;  %v3545_v48 = vpop.permute.xlu0 %458 }
  0x90   :  { %812 = vbcast.lane.b32.xlu1 %v3453_v25, 280  ;;  %637 = vbcast.lane.b32.xlu0 %v3403_v14, 264 }
  0x92   :  { %v3549_v49 = vpop.permute.xlu1 %83  ;;  %v3551_v50 = vpop.permute.xlu0 %48 }
  0x93   :  { %v329_v46 = vmul.f32 %v3574_v57, %v3549_v49  ;;  %v321_v58 = vmul.f32 %v3574_v57, %v3551_v50 }
  0x94   :  { %913 = vbcast.lane.b32.xlu1 %v3502_v33, 272  ;;  %847 = vbcast.lane.b32.xlu0 %v3458_v26, 280 }
  0x96   :  { %v3555_v51 = vpop.permute.xlu1 %149  ;;  %v3557_v52 = vpop.permute.xlu0 %145 }
  0x97   :  { %v344_v49 = vmul.f32 %v3574_v57, %v3555_v51  ;;  %v343_v50 = vmul.f32 %v3574_v57, %v3557_v52 }
  0x98   :  { %979 = vbcast.lane.b32.xlu1 %v3422_v19, 264  ;;  %975 = vbcast.lane.b32.xlu0 %v3422_v19, 256 }
  0x9a   :  { %v3567_v55 = vpop.permute.xlu1 %431  ;;  %v3569_v56 = vpop.permute.xlu0 %396 }
  0x9c   :  { %192 = vbcast.lane.b32.xlu1 %v3466_v28, 280  ;;  %126 = vbcast.lane.b32.xlu0 %v3416_v17, 288 }
  0x9e   :  { %v3577_v59 = vpop.permute.xlu1 %497  ;;  %v3579_v60 = vpop.permute.xlu0 %493 }
  0x9f   :  { %v692_v7 = vmul.f32 %v3565_v54, %v3577_v59  ;;  %v691_v1 = vmul.f32 %v3565_v54, %v3579_v60 }
  0xa0   :  { %474 = vbcast.lane.b32.xlu1 %v3427_v20, 288  ;;  %258 = vbcast.lane.b32.xlu0 %v3510_v34, 272 }
  0xa2   :  { %v805_v8 = vpop.permute.xlu1 %804  ;;  %v801_v11 = vpop.permute.xlu0 %800 }
  0xa3   :  { %v1080_v18 = vmul.f32 %v3582_v61, %v805_v8  ;;  %v1079_v21 = vmul.f32 %v3582_v61, %v801_v11 }
  0xa4   :  { %606 = vbcast.lane.b32.xlu1 %v3394_v12, 272  ;;  %540 = vbcast.lane.b32.xlu0 %v3473_v29, 280 }
  0xa5   :  { %v3597_v40 = vadd.f32 %v1080_v18, %v732_v3  ;;  %v3599_v41 = vadd.f32 %v1079_v21, %v731_v13  ;;  %v684_v18 = vmul.f32 %v3565_v54, %v3543_v47  ;;  %v683_v21 = vmul.f32 %v3565_v54, %v3545_v48 }
  0xa6   :  { %v840_v43 = vpop.permute.xlu1 %839  ;;  %v836_v53 = vpop.permute.xlu0 %835 }
  0xa7   :  { %v1088_v62 = vmul.f32 %v3582_v61, %v840_v43  ;;  %v1087_v39 = vmul.f32 %v3582_v61, %v836_v53  ;;  %v748_v53 = vadd.f32 %v684_v18, %v336_v27  ;;  %v5107_v51 = vmax.f32 %v3599_v41, %v3597_v40 }
  0xa8   :  { %948 = vbcast.lane.b32.xlu1 %v3519_v35, 272  ;;  %882 = vbcast.lane.b32.xlu0 %v3478_v30, 280 }
  0xa9   :  { %v3607_v36 = vadd.f32 %v1088_v62, %v740_v42  ;;  %v3609_v63 = vadd.f32 %v1087_v39, %v739_v44  ;;  %v747_v44 = vadd.f32 %v683_v21, %v335_v37 }
  0xaa   :  { %v3611_v2 = vpop.permute.xlu1 %180  ;;  %v3613_v3 = vpop.permute.xlu0 %118 }
  0xac   :  { %1014 = vbcast.lane.b32.xlu1 %v3448_v24, 264  ;;  %1010 = vbcast.lane.b32.xlu0 %v3448_v24, 256 }
  0xae   :  { %v3619_v8 = vpop.permute.xlu1 %466  ;;  %v3621_v11 = vpop.permute.xlu0 %184 }
  0xb0   :  { %95 = vbcast.lane.b32.xlu1 %v3366_v5, 296  ;;  %60 = vbcast.lane.b32.xlu0 %v3369_v6, 296 }
  0xb2   :  { %v3625_v13 = vpop.permute.xlu1 %532  ;;  %v3627_v16 = vpop.permute.xlu0 %528 }
  0xb4   :  { %227 = vbcast.lane.b32.xlu1 %v3485_v31, 280  ;;  %161 = vbcast.lane.b32.xlu0 %v3437_v22, 288 }
  0xb6   :  { %v875_v42 = vpop.permute.xlu1 %874  ;;  %v871_v43 = vpop.permute.xlu0 %870 }
  0xb7   :  { %v1096_v62 = vmul.f32 %v3582_v61, %v875_v42  ;;  %v1095_v47 = vmul.f32 %v3582_v61, %v871_v43 }
  0xb8   :  { %408 = vbcast.lane.b32.xlu1 %v3382_v9, 296  ;;  %293 = vbcast.lane.b32.xlu0 %v3529_v38, 272 }
  0xb9   :  { %v3643_v48 = vadd.f32 %v1096_v62, %v748_v53  ;;  %v3645_v39 = vadd.f32 %v1095_v47, %v747_v44  ;;  %v677_v62 = vmul.f32 %v3565_v54, %v3567_v55  ;;  %v669_v47 = vmul.f32 %v3565_v54, %v3569_v56 }
  0xba   :  { %v3647_v45 = vpop.permute.xlu1 %87  ;;  %v3649_v0 = vpop.permute.xlu0 %52 }
  0xbb   :  { %5101 = vst [vmem:[#allocation4_spill] sm:$0xff] %v3647_v45  ;;  %v733_v56 = vadd.f32 %v669_v47, %v321_v58  ;;  %v755_v45 = vadd.f32 %v691_v1, %v343_v50  ;;  %v337_v50 = vmul.f32 %v3574_v57, %v3613_v3  ;;  %v352_v3 = vmul.f32 %v3574_v57, %v3621_v11 }
  0xbc   :  { %509 = vbcast.lane.b32.xlu1 %v3444_v23, 288  ;;  %443 = vbcast.lane.b32.xlu0 %v3408_v15, 296 }
  0xbe   :  { %v3655_v18 = vpop.permute.xlu1 %215  ;;  %v3657_v21 = vpop.permute.xlu0 %153 }
  0xbf   :  { %5102 = vst [vmem:[#allocation5_spill] sm:$0xff] %v3655_v18 }
  0xc0   :  { %641 = vbcast.lane.b32.xlu1 %v3403_v14, 272  ;;  %575 = vbcast.lane.b32.xlu0 %v3385_v10, 280 }
  0xc2   :  { %v3661_v27 = vpop.permute.xlu1 %400  ;;  %v3663_v37 = vpop.permute.xlu0 %219 }
  0xc3   :  { %5103 = vst [vmem:[#allocation6_spill] sm:$0xff] %v3663_v37  ;;  %v741_v37 = vadd.f32 %v677_v62, %v329_v46  ;;  %v5106_v62 = vmax.f32 %v3609_v63, %v3607_v36 }
  0xc4   :  { %851 = vbcast.lane.b32.xlu1 %v3458_v26, 288  ;;  %816 = vbcast.lane.b32.xlu0 %v3453_v25, 288 }
  0xc6   :  { %v3667_v42 = vpop.permute.xlu1 %501  ;;  %v3669_v43 = vpop.permute.xlu0 %435 }
  0xc8   :  { %983 = vbcast.lane.b32.xlu1 %v3422_v19, 272  ;;  %917 = vbcast.lane.b32.xlu0 %v3502_v33, 280 }
  0xca   :  { %v3673_v53 = vpop.permute.xlu1 %567  ;;  %v3675_v44 = vpop.permute.xlu0 %563 }
  0xcb   :  { %5104 = vst [vmem:[#allocation7_spill] sm:$0xff] %v3673_v53  ;;  %5105 = vst [vmem:[#allocation8_spill] sm:$0xff] %v3675_v44  ;;  %v756_v53 = vadd.f32 %v692_v7, %v344_v49  ;;  %v699_v49 = vmul.f32 %v3565_v54, %v3627_v16 }
  0xcc   :  { %1049 = vbcast.lane.b32.xlu1 %v3489_v32, 264  ;;  %1045 = vbcast.lane.b32.xlu0 %v3489_v32, 256 }
  0xce   :  { %v844_v55 = vpop.permute.xlu1 %843  ;;  %v809_v4 = vpop.permute.xlu0 %808 }
  0xcf   :  { %v1089_v18 = vmul.f32 %v3582_v61, %v844_v55  ;;  %v1081_v44 = vmul.f32 %v3582_v61, %v809_v4 }
  0xd0   :  { %196 = vbcast.lane.b32.xlu1 %v3466_v28, 288  ;;  %130 = vbcast.lane.b32.xlu0 %v3416_v17, 296 }
  0xd1   :  { %v1153_v59 = vadd.f32 %v1089_v18, %v741_v37  ;;  %v1145_v60 = vadd.f32 %v1081_v44, %v733_v56 }
  0xd2   :  { %v910_v46 = vpop.permute.xlu1 %909  ;;  %v906_v58 = vpop.permute.xlu0 %905 }
  0xd3   :  { %v3702_v4 = vmax.f32 %v5106_v62, %v1153_v59  ;;  %v3707_v47 = vmax.f32 %v5107_v51, %v1145_v60  ;;  %v1104_v52 = vmul.f32 %v3582_v61, %v910_v46  ;;  %v1103_v55 = vmul.f32 %v3582_v61, %v906_v58 }
  0xd4   :  { %478 = vbcast.lane.b32.xlu1 %v3427_v20, 296  ;;  %262 = vbcast.lane.b32.xlu0 %v3510_v34, 280  ;;  %v351_v59 = vmul.f32 %v3574_v57, %v3611_v2  ;;  %v700_v58 = vmul.f32 %v3565_v54, %v3625_v13  ;;  %v5108_v13 = vmax.f32 %v3645_v39, %v3643_v48 }
  0xd5   :  { %v3713_v1 = vadd.f32 %v1104_v52, %v756_v53  ;;  %v3715_v7 = vadd.f32 %v1103_v55, %v755_v45  ;;  %v685_v53 = vmul.f32 %v3565_v54, %v3619_v8 }
  0xd6   :  { %v3717_v36 = vpop.permute.xlu1 %188  ;;  %v3719_v63 = vpop.permute.xlu0 %122  ;;  %v763_v62 = vadd.f32 %v699_v49, %v351_v59 }
  0xd7   :  { %v749_v60 = vadd.f32 %v685_v53, %v337_v50  ;;  %v764_v50 = vadd.f32 %v700_v58, %v352_v3 }
  0xd8   :  { %610 = vbcast.lane.b32.xlu1 %v3394_v12, 280  ;;  %544 = vbcast.lane.b32.xlu0 %v3473_v29, 288 }
  0xda   :  { %v3725_v41 = vpop.permute.xlu1 %254  ;;  %v3727_v18 = vpop.permute.xlu0 %250 }
  0xdc   :  { %952 = vbcast.lane.b32.xlu1 %v3519_v35, 280  ;;  %886 = vbcast.lane.b32.xlu0 %v3478_v30, 288 }
  0xde   :  { %v3731_v45 = vpop.permute.xlu1 %536  ;;  %v3733_v37 = vpop.permute.xlu0 %470 }
  0xe0   :  { %64 = vbcast.lane.b32.xlu1 %v3369_v6, 304  ;;  %1018 = vbcast.lane.b32.xlu0 %v3448_v24, 272 }
  0xe2   :  { %v3739_v44 = vpop.permute.xlu1 %602  ;;  %v3741_v56 = vpop.permute.xlu0 %598 }
  0xe4   :  { %165 = vbcast.lane.b32.xlu1 %v3437_v22, 296  ;;  %99 = vbcast.lane.b32.xlu0 %v3366_v5, 304 }
  0xe6   :  { %v941_v46 = vpop.permute.xlu1 %940  ;;  %v879_v8 = vpop.permute.xlu0 %878 }
  0xe7   :  { %v1111_v51 = vmul.f32 %v3582_v61, %v941_v46  ;;  %v1097_v16 = vmul.f32 %v3582_v61, %v879_v8 }
  0xe8   :  { %297 = vbcast.lane.b32.xlu1 %v3529_v38, 280  ;;  %231 = vbcast.lane.b32.xlu0 %v3485_v31, 288 }
  0xe9   :  { %v3759_v52 = vadd.f32 %v1111_v51, %v763_v62  ;;  %v1161_v2 = vadd.f32 %v1097_v16, %v749_v60 }
  0xea   :  { %v3761_v55 = vpop.permute.xlu1 %56  ;;  %v945_v53 = vpop.permute.xlu0 %944 }
  0xeb   :  { %v3766_v49 = vmax.f32 %v5108_v13, %v1161_v2  ;;  %v1112_v59 = vmul.f32 %v3582_v61, %v945_v53  ;;  %v670_v53 = vmul.f32 %v3565_v54, %v3661_v27  ;;  %v693_v13 = vmul.f32 %v3565_v54, %v3667_v42 }
  0xec   :  { %447 = vbcast.lane.b32.xlu1 %v3408_v15, 304  ;;  %412 = vbcast.lane.b32.xlu0 %v3382_v9, 304  ;;  %v345_v27 = vmul.f32 %v3574_v57, %v3657_v21 }
  0xed   :  { %v3771_v46 = vadd.f32 %v1112_v59, %v764_v50  ;;  %v322_v50 = vmul.f32 %v3574_v57, %v3649_v0  ;;  %v5118_v0 = vld [vmem:[#allocation4_spill] sm:$0xff] }
  0xee   :  { %v3773_v11 = vpop.permute.xlu1 %157  ;;  %v3775_v60 = vpop.permute.xlu0 %91 }
  0xef   :  { %5109 = vst [vmem:[#allocation9_spill] sm:$0xff] %v3773_v11  ;;  %5110 = vst [vmem:[#allocation10_spill] sm:$0xff] %v3775_v60  ;;  %v734_v40 = vadd.f32 %v670_v53, %v322_v50  ;;  %v5121_v50 = vld [vmem:[#allocation8_spill] sm:$0xff] }
  0xf0   :  { %579 = vbcast.lane.b32.xlu1 %v3385_v10, 288  ;;  %513 = vbcast.lane.b32.xlu0 %v3444_v23, 296 }
  0xf2   :  { %v3781_v48 = vpop.permute.xlu1 %285  ;;  %v3783_v39 = vpop.permute.xlu0 %223 }
  0xf3   :  { %5111 = vst [vmem:[#allocation11_spill] sm:$0xff] %v3781_v48  ;;  %5112 = vst [vmem:[#allocation12_spill] sm:$0xff] %v3783_v39  ;;  %v757_v39 = vadd.f32 %v693_v13, %v345_v27 }
  0xf4   :  { %820 = vbcast.lane.b32.xlu1 %v3453_v25, 296  ;;  %645 = vbcast.lane.b32.xlu0 %v3403_v14, 280 }
  0xf6   :  { %v3787_v58 = vpop.permute.xlu1 %404  ;;  %v3789_v62 = vpop.permute.xlu0 %289 }
  0xf7   :  { %5113 = vst [vmem:[#allocation13_spill] sm:$0xff] %v3789_v62  ;;  %v678_v62 = vmul.f32 %v3565_v54, %v3669_v43  ;;  %v707_v43 = vmul.f32 %v3565_v54, %v5121_v50 }
  0xf8   :  { %921 = vbcast.lane.b32.xlu1 %v3502_v33, 288  ;;  %855 = vbcast.lane.b32.xlu0 %v3458_v26, 296 }
  0xfa   :  { %v3793_v51 = vpop.permute.xlu1 %505  ;;  %v3795_v16 = vpop.permute.xlu0 %439 }
  0xfb   :  { %5114 = vst [vmem:[#allocation14_spill] sm:$0xff] %v3793_v51 }
  0xfc   :  { %1053 = vbcast.lane.b32.xlu1 %v3489_v32, 272  ;;  %987 = vbcast.lane.b32.xlu0 %v3422_v19, 280 }
  0xfe   :  { %v3799_v3 = vpop.permute.xlu1 %633  ;;  %v3801_v2 = vpop.permute.xlu0 %571 }
  0xff   :  { %5115 = vst [vmem:[#allocation15_spill] sm:$0xff] %v3799_v3  ;;  %5116 = vst [vmem:[#allocation16_spill] sm:$0xff] %v3801_v2  ;;  %v330_v3 = vmul.f32 %v3574_v57, %v5118_v0  ;;  %v5122_v0 = vld [vmem:[#allocation5_spill] sm:$0xff] }
 0x100   :  { %200 = vbcast.lane.b32.xlu1 %v3466_v28, 296  ;;  %134 = vbcast.lane.b32.xlu0 %v3416_v17, 304 }
 0x101   :  { %v742_v2 = vadd.f32 %v678_v62, %v330_v3 }
 0x102   :  { %v813_v59 = vpop.permute.xlu1 %812  ;;  %v3811_v8 = vpop.permute.xlu0 %637 }
 0x103   :  { %5117 = vst [vmem:[#allocation17_spill] sm:$0xff] %v3811_v8  ;;  %v1082_v48 = vmul.f32 %v3582_v61, %v813_v59  ;;  %v5120_v8 = vld [vmem:[#allocation7_spill] sm:$0xff] }
 0x104   :  { %482 = vbcast.lane.b32.xlu1 %v3427_v20, 304  ;;  %266 = vbcast.lane.b32.xlu0 %v3510_v34, 288  ;;  %v708_v53 = vmul.f32 %v3565_v54, %v5120_v8 }
 0x105   :  { %v3822_v42 = vadd.f32 %v1082_v48, %v734_v40  ;;  %v359_v40 = vmul.f32 %v3574_v57, %v5122_v0  ;;  %v5123_v48 = vld [vmem:[#allocation6_spill] sm:$0xff] }
 0x106   :  { %v914_v59 = vpop.permute.xlu1 %913  ;;  %v848_v11 = vpop.permute.xlu0 %847  ;;  %v360_v13 = vmul.f32 %v3574_v57, %v5123_v48 }
 0x107   :  { %5119 = vst [vmem:[#allocation4_spill] sm:$0xff] %v3822_v42  ;;  %v1105_v51 = vmul.f32 %v3582_v61, %v914_v59  ;;  %v1090_v60 = vmul.f32 %v3582_v61, %v848_v11  ;;  %v771_v3 = vadd.f32 %v707_v43, %v359_v40  ;;  %v5124_v11 = vmax.f32 %v3715_v7, %v3713_v1 }
 0x108   :  { %614 = vbcast.lane.b32.xlu1 %v3394_v12, 288  ;;  %548 = vbcast.lane.b32.xlu0 %v3473_v29, 296  ;;  %v772_v62 = vadd.f32 %v708_v53, %v360_v13  ;;  %v353_v40 = vmul.f32 %v3574_v57, %v3717_v36  ;;  %v716_v13 = vmul.f32 %v3565_v54, %v3739_v44 }
 0x109   :  { %v1169_v8 = vadd.f32 %v1105_v51, %v757_v39  ;;  %v3838_v27 = vadd.f32 %v1090_v60, %v742_v2  ;;  %v368_v36 = vmul.f32 %v3574_v57, %v3725_v41 }
 0x10a   :  { %v980_v50 = vpop.permute.xlu1 %979  ;;  %v976_v21 = vpop.permute.xlu0 %975 }
 0x10b   :  { %v3843_v59 = vmax.f32 %v5124_v11, %v1169_v8  ;;  %v1120_v48 = vmul.f32 %v3582_v61, %v980_v50  ;;  %v1119_v42 = vmul.f32 %v3582_v61, %v976_v21  ;;  %v701_v21 = vmul.f32 %v3565_v54, %v3731_v45 }
 0x10c   :  { %956 = vbcast.lane.b32.xlu1 %v3519_v35, 288  ;;  %890 = vbcast.lane.b32.xlu0 %v3478_v30, 296  ;;  %v715_v8 = vmul.f32 %v3565_v54, %v3741_v56 }
 0x10d   :  { %v3851_v60 = vadd.f32 %v1120_v48, %v772_v62  ;;  %v3853_v39 = vadd.f32 %v1119_v42, %v771_v3  ;;  %v765_v3 = vadd.f32 %v701_v21, %v353_v40  ;;  %v780_v48 = vadd.f32 %v716_v13, %v368_v36 }
 0x10e   :  { %v3855_v51 = vpop.permute.xlu1 %192  ;;  %v3857_v1 = vpop.permute.xlu0 %126 }
 0x110   :  { %68 = vbcast.lane.b32.xlu1 %v3369_v6, 312  ;;  %1022 = vbcast.lane.b32.xlu0 %v3448_v24, 280  ;;  %v686_v6 = vmul.f32 %v3565_v54, %v3733_v37 }
 0x112   :  { %v3863_v2 = vpop.permute.xlu1 %474  ;;  %v3865_v53 = vpop.permute.xlu0 %258 }
 0x114   :  { %169 = vbcast.lane.b32.xlu1 %v3437_v22, 304  ;;  %103 = vbcast.lane.b32.xlu0 %v3366_v5, 312  ;;  %v338_v5 = vmul.f32 %v3574_v57, %v3719_v63  ;;  %v367_v63 = vmul.f32 %v3574_v57, %v3727_v18 }
 0x116   :  { %v3869_v42 = vpop.permute.xlu1 %606  ;;  %v3871_v43 = vpop.permute.xlu0 %540  ;;  %v750_v37 = vadd.f32 %v686_v6, %v338_v5  ;;  %v779_v21 = vadd.f32 %v715_v8, %v367_v63  ;;  %v5125_v5 = vmax.f32 %v3759_v52, %v3771_v46 }
 0x118   :  { %301 = vbcast.lane.b32.xlu1 %v3529_v38, 288  ;;  %235 = vbcast.lane.b32.xlu0 %v3485_v31, 296 }
 0x11a   :  { %v949_v45 = vpop.permute.xlu1 %948  ;;  %v883_v62 = vpop.permute.xlu0 %882 }
 0x11b   :  { %v1113_v50 = vmul.f32 %v3582_v61, %v949_v45  ;;  %v1098_v11 = vmul.f32 %v3582_v61, %v883_v62 }
 0x11c   :  { %451 = vbcast.lane.b32.xlu1 %v3408_v15, 312  ;;  %416 = vbcast.lane.b32.xlu0 %v3382_v9, 312 }
 0x11d   :  { %v1177_v44 = vadd.f32 %v1113_v50, %v765_v3  ;;  %v3895_v56 = vadd.f32 %v1098_v11, %v750_v37 }
 0x11e   :  { %v1015_v6 = vpop.permute.xlu1 %1014  ;;  %v1011_v40 = vpop.permute.xlu0 %1010 }
 0x11f   :  { %v3900_v45 = vmax.f32 %v5125_v5, %v1177_v44  ;;  %v1128_v18 = vmul.f32 %v3582_v61, %v1015_v6  ;;  %v1127_v15 = vmul.f32 %v3582_v61, %v1011_v40  ;;  %v323_v6 = vmul.f32 %v3574_v57, %v3761_v55  ;;  %v5132_v40 = vld [vmem:[#allocation10_spill] sm:$0xff] }
 0x120   :  { %583 = vbcast.lane.b32.xlu1 %v3385_v10, 296  ;;  %517 = vbcast.lane.b32.xlu0 %v3444_v23, 304  ;;  %v5133_v5 = vld [vmem:[#allocation14_spill] sm:$0xff] }
 0x121   :  { %v3908_v9 = vadd.f32 %v1128_v18, %v780_v48  ;;  %v3910_v13 = vadd.f32 %v1127_v15, %v779_v21  ;;  %v671_v48 = vmul.f32 %v3565_v54, %v3787_v58  ;;  %v679_v21 = vmul.f32 %v3565_v54, %v3795_v16  ;;  %v5134_v15 = vld [vmem:[#allocation16_spill] sm:$0xff] }
 0x122   :  { %v3912_v8 = vpop.permute.xlu1 %95  ;;  %v3914_v52 = vpop.permute.xlu0 %60  ;;  %v694_v18 = vmul.f32 %v3565_v54, %v5133_v5  ;;  %v709_v46 = vmul.f32 %v3565_v54, %v5134_v15 }
 0x123   :  { %5126 = vst [vmem:[#allocation7_spill] sm:$0xff] %v3912_v8  ;;  %v735_v7 = vadd.f32 %v671_v48, %v323_v6  ;;  %v5138_v6 = vld [vmem:[#allocation17_spill] sm:$0xff]  ;;  %v5140_v8 = vld [vmem:[#allocation4_spill] sm:$0xff] }
 0x124   :  { %824 = vbcast.lane.b32.xlu1 %v3453_v25, 304  ;;  %649 = vbcast.lane.b32.xlu0 %v3403_v14, 288 }
 0x126   :  { %v3920_v62 = vpop.permute.xlu1 %227  ;;  %v3922_v3 = vpop.permute.xlu0 %161 }
 0x127   :  { %5127 = vst [vmem:[#allocation8_spill] sm:$0xff] %v3920_v62  ;;  %5128 = vst [vmem:[#allocation5_spill] sm:$0xff] %v3922_v3  ;;  %v5135_v62 = vld [vmem:[#allocation9_spill] sm:$0xff]  ;;  %v5141_v3 = vmax.f32 %v3707_v47, %v5140_v8 }
 0x128   :  { %925 = vbcast.lane.b32.xlu1 %v3502_v33, 296  ;;  %859 = vbcast.lane.b32.xlu0 %v3458_v26, 304  ;;  %v346_v55 = vmul.f32 %v3574_v57, %v5135_v62  ;;  %v5139_v62 = vmax.f32 %v3702_v4, %v3838_v27 }
 0x12a   :  { %v3926_v37 = vpop.permute.xlu1 %408  ;;  %v3928_v50 = vpop.permute.xlu0 %293 }
 0x12b   :  { %5129 = vst [vmem:[#allocation6_spill] sm:$0xff] %v3928_v50  ;;  %v758_v50 = vadd.f32 %v694_v18, %v346_v55  ;;  %v5143_v18 = vld [vmem:[#allocation13_spill] sm:$0xff] }
 0x12c   :  { %1057 = vbcast.lane.b32.xlu1 %v3489_v32, 280  ;;  %991 = vbcast.lane.b32.xlu0 %v3422_v19, 288 }
 0x12e   :  { %v3932_v11 = vpop.permute.xlu1 %509  ;;  %v3934_v36 = vpop.permute.xlu0 %443 }
 0x130   :  { %204 = vbcast.lane.b32.xlu1 %v3466_v28, 304  ;;  %138 = vbcast.lane.b32.xlu0 %v3416_v17, 312  ;;  %v331_v17 = vmul.f32 %v3574_v57, %v5132_v40 }
 0x132   :  { %v3938_v63 = vpop.permute.xlu1 %641  ;;  %v3940_v44 = vpop.permute.xlu0 %575  ;;  %v743_v16 = vadd.f32 %v679_v21, %v331_v17 }
 0x133   :  { %5130 = vst [vmem:[#allocation18_spill] sm:$0xff] %v3938_v63  ;;  %5131 = vst [vmem:[#allocation19_spill] sm:$0xff] %v3940_v44  ;;  %v5136_v44 = vld [vmem:[#allocation12_spill] sm:$0xff]  ;;  %v5137_v63 = vld [vmem:[#allocation15_spill] sm:$0xff] }
 0x134   :  { %486 = vbcast.lane.b32.xlu1 %v3427_v20, 312  ;;  %270 = vbcast.lane.b32.xlu0 %v3510_v34, 296  ;;  %v361_v40 = vmul.f32 %v3574_v57, %v5136_v44  ;;  %v723_v48 = vmul.f32 %v3565_v54, %v5137_v63 }
 0x136   :  { %v852_v58 = vpop.permute.xlu1 %851  ;;  %v817_v41 = vpop.permute.xlu0 %816  ;;  %v773_v21 = vadd.f32 %v709_v46, %v361_v40  ;;  %v5142_v46 = vld [vmem:[#allocation11_spill] sm:$0xff]  ;;  %v5144_v40 = vmax.f32 %v3853_v39, %v3851_v60 }
 0x137   :  { %v1091_v20 = vmul.f32 %v3582_v61, %v852_v58  ;;  %v1083_v0 = vmul.f32 %v3582_v61, %v817_v41  ;;  %v724_v41 = vmul.f32 %v3565_v54, %v5138_v6  ;;  %v375_v63 = vmul.f32 %v3574_v57, %v5142_v46 }
 0x138   :  { %618 = vbcast.lane.b32.xlu1 %v3394_v12, 296  ;;  %552 = vbcast.lane.b32.xlu0 %v3473_v29, 304  ;;  %v339_v46 = vmul.f32 %v3574_v57, %v3857_v1 }
 0x139   :  { %v1155_v5 = vadd.f32 %v1091_v20, %v743_v16  ;;  %v1147_v15 = vadd.f32 %v1083_v0, %v735_v7  ;;  %v376_v20 = vmul.f32 %v3574_v57, %v5143_v18  ;;  %v787_v47 = vadd.f32 %v723_v48, %v375_v63 }
 0x13a   :  { %v984_v17 = vpop.permute.xlu1 %983  ;;  %v918_v58 = vpop.permute.xlu0 %917 }
 0x13b   :  { %v3971_v44 = vmax.f32 %v5139_v62, %v1155_v5  ;;  %v3976_v16 = vmax.f32 %v5141_v3, %v1147_v15  ;;  %v1121_v0 = vmul.f32 %v3582_v61, %v984_v17  ;;  %v1106_v7 = vmul.f32 %v3582_v61, %v918_v58 }
 0x13c   :  { %960 = vbcast.lane.b32.xlu1 %v3519_v35, 296  ;;  %894 = vbcast.lane.b32.xlu0 %v3478_v30, 304  ;;  %v788_v8 = vadd.f32 %v724_v41, %v376_v20  ;;  %v687_v58 = vmul.f32 %v3565_v54, %v3863_v2  ;;  %v3238_v20 = vld [vmem:[%s5085_s2 + $0x40] sm:$0xff]  }
 0x13d   :  { %v1185_v4 = vadd.f32 %v1121_v0, %v773_v21  ;;  %v3986_v27 = vadd.f32 %v1106_v7, %v758_v50  ;;  %v702_v7 = vmul.f32 %v3565_v54, %v3871_v43  ;;  %v717_v43 = vmul.f32 %v3565_v54, %v3869_v42  ;;  %3072 = vmatprep.subr.bf16.mxu0 %v3238_v20  ;;  %v3240_v42 = vld [vmem:[%s5085_s2 + $0xc0] sm:$0xff]  }
 0x13e   :  { %v1050_v3 = vpop.permute.xlu1 %1049  ;;  %v1046_v55 = vpop.permute.xlu0 %1045  ;;  %v751_v63 = vadd.f32 %v687_v58, %v339_v46  ;;  %3094 = vmatprep.subr.bf16.mxu1 %v3240_v42  ;;  %v3242_v46 = vld [vmem:[%s5085_s2 + $0x48] sm:$0xff]   ;;  %v5146_v20 = vmax.f32 %v3910_v13, %v3908_v9  ;;  %v3249_v9 = vld [vmem:[%s5085_s2 + $0x90] sm:$0xff]  }
 0x13f   :  { %v3991_v5 = vmax.f32 %v5144_v40, %v1185_v4  ;;  %v1248_v15 = vmax.f32 %v3843_v59, %v3986_v27  ;;  %v1136_v6 = vmul.f32 %v3582_v61, %v1050_v3  ;;  %v1135_v17 = vmul.f32 %v3582_v61, %v1046_v55 }
 0x140   :  { %173 = vbcast.lane.b32.xlu1 %v3437_v22, 312  ;;  %1026 = vbcast.lane.b32.xlu0 %v3448_v24, 288 }
 0x141   :  { %v3999_v50 = vadd.f32 %v1136_v6, %v788_v8  ;;  %v4001_v48 = vadd.f32 %v1135_v17, %v787_v47  ;;  %v3239_v47 = vld [vmem:[%s5085_s2] sm:$0xff]   ;;  %v5145_v17 = vmax.f32 %v3766_v49, %v3895_v56  ;;  %v3244_v49 = vld [vmem:[%s5085_s2 + $0xc8] sm:$0xff]  }
 0x142   :  { %v4003_v21 = vpop.permute.xlu1 %196  ;;  %v4005_v60 = vpop.permute.xlu0 %130  ;;  %3073 = vmatpush3.bf16.msra.mxu0 %v3239_v47  ;;  %v3241_v6 = vld [vmem:[%s5085_s2 + $0x80] sm:$0xff]  }
 0x143   :  { %v1298_v39 = vmax.f32 %v4001_v48, %v3999_v50  ;;  %3095 = vmatpush3.bf16.msra.mxu1 %v3241_v6  ;;  %3074 = vmatprep.subr.bf16.mxu0 %v3242_v46  ;;  %v3254_v6 = vld [vmem:[%s5085_s2 + $0x60] sm:$0xff]   ;;  %v3275_v50 = vld [vmem:[%s5087_s3 + $0x8] sm:$0xff]  }
 0x144   :  { %305 = vbcast.lane.b32.xlu1 %v3529_v38, 296  ;;  %239 = vbcast.lane.b32.xlu0 %v3485_v31, 304 }
 0x145   :  { %3096 = vmatprep.subr.bf16.mxu1 %v3244_v49  ;;  %v3259_v49 = vld [vmem:[%s5085_s2 + $0x28] sm:$0xff]  }
 0x146   :  { %v4011_v41 = vpop.permute.xlu1 %478  ;;  %v4013_v22 = vpop.permute.xlu0 %262 }
 0x148   :  { %587 = vbcast.lane.b32.xlu1 %v3385_v10, 304  ;;  %521 = vbcast.lane.b32.xlu0 %v3444_v23, 312  ;;  %v354_v23 = vmul.f32 %v3574_v57, %v3855_v51  ;;  %v369_v51 = vmul.f32 %v3574_v57, %v3865_v53 }
 0x14a   :  { %v4019_v62 = vpop.permute.xlu1 %610  ;;  %v4021_v0 = vpop.permute.xlu0 %544  ;;  %v766_v4 = vadd.f32 %v702_v7, %v354_v23  ;;  %v3243_v23 = vld [vmem:[%s5085_s2 + $0x8] sm:$0xff]  }
 0x14b   :  { %3075 = vmatpush3.bf16.msra.mxu0 %v3243_v23  ;;  %v672_v23 = vmul.f32 %v3565_v54, %v3926_v37  ;;  %v695_v37 = vmul.f32 %v3565_v54, %v3932_v11  ;;  %v5147_v11 = vld [vmem:[#allocation5_spill] sm:$0xff] }
 0x14c   :  { %828 = vbcast.lane.b32.xlu1 %v3453_v25, 312  ;;  %653 = vbcast.lane.b32.xlu0 %v3403_v14, 296 }
 0x14e   :  { %v953_v18 = vpop.permute.xlu1 %952  ;;  %v887_v2 = vpop.permute.xlu0 %886 }
 0x14f   :  { %v1114_v1 = vmul.f32 %v3582_v61, %v953_v18  ;;  %v1099_v25 = vmul.f32 %v3582_v61, %v887_v2  ;;  %v3245_v2 = vld [vmem:[%s5085_s2 + $0x88] sm:$0xff]  }
 0x150   :  { %929 = vbcast.lane.b32.xlu1 %v3502_v33, 304  ;;  %863 = vbcast.lane.b32.xlu0 %v3458_v26, 312  ;;  %v781_v26 = vadd.f32 %v717_v43, %v369_v51  ;;  %v3251_v51 = vld [vmem:[%s5085_s2 + $0x18] sm:$0xff]  }
 0x151   :  { %v4045_v8 = vadd.f32 %v1114_v1, %v766_v4  ;;  %v1163_v3 = vadd.f32 %v1099_v25, %v751_v63  ;;  %v3246_v4 = vld [vmem:[%s5085_s2 + $0x50] sm:$0xff]   ;;  %3097 = vmatpush3.bf16.msra.mxu1 %v3245_v2  ;;  %v3260_v2 = vld [vmem:[%s5085_s2 + $0xe8] sm:$0xff]  }
 0x152   :  { %v4050_v55 = vpop.permute.xlu1 %64  ;;  %v1019_v40 = vpop.permute.xlu0 %1018  ;;  %v3247_v1 = vld [vmem:[%s5085_s2 + $0x10] sm:$0xff]   ;;  %3076 = vmatprep.subr.bf16.mxu0 %v3246_v4 }
 0x153   :  { %v1261_v53 = vmax.f32 %v3900_v45, %v4045_v8  ;;  %v4060_v58 = vmax.f32 %v5145_v17, %v1163_v3  ;;  %v1129_v7 = vmul.f32 %v3582_v61, %v1019_v40  ;;  %v3248_v25 = vld [vmem:[%s5085_s2 + $0xd0] sm:$0xff]   ;;  %3077 = vmatpush3.bf16.msra.mxu0 %v3247_v1  ;;  %v3252_v3 = vld [vmem:[%s5085_s2 + $0xd8] sm:$0xff]   ;;  %v3256_v17 = vld [vmem:[%s5085_s2 + $0xe0] sm:$0xff]  }
 0x154   :  { %1061 = vbcast.lane.b32.xlu1 %v3489_v32, 288  ;;  %995 = vbcast.lane.b32.xlu0 %v3422_v19, 296  ;;  %v3261_v1 = vld [vmem:[%s5085_s2 + $0xa8] sm:$0xff]  }
 0x155   :  { %v1193_v63 = vadd.f32 %v1129_v7, %v781_v26  ;;  %3098 = vmatprep.subr.bf16.mxu1 %v3248_v25  ;;  %v3255_v26 = vld [vmem:[%s5085_s2 + $0x20] sm:$0xff]   ;;  %v3279_v45 = vld [vmem:[%s5087_s3 + $0x28] sm:$0xff]  }
 0x156   :  { %v4074_v56 = vpop.permute.xlu1 %165  ;;  %v4076_v18 = vpop.permute.xlu0 %99  ;;  %3099 = vmatpush3.bf16.msra.mxu1 %v3249_v9  ;;  %v680_v9 = vmul.f32 %v3565_v54, %v3934_v36  ;;  %v3264_v36 = vld [vmem:[%s5085_s2 + $0xf0] sm:$0xff]  }
 0x157   :  { %v4084_v43 = vmax.f32 %v5146_v20, %v1193_v63  ;;  %3100 = vmatprep.subr.bf16.mxu1 %v3252_v3  ;;  %v3258_v63 = vld [vmem:[%s5085_s2 + $0x68] sm:$0xff]   ;;  %v324_v20 = vmul.f32 %v3574_v57, %v3914_v52  ;;  %v3263_v3 = vld [vmem:[%s5085_s2 + $0x30] sm:$0xff]  }
 0x158   :  { %274 = vbcast.lane.b32.xlu1 %v3510_v34, 304  ;;  %208 = vbcast.lane.b32.xlu0 %v3466_v28, 312  ;;  %v3250_v28 = vld [vmem:[%s5085_s2 + $0x58] sm:$0xff]  }
 0x159   :  { %3078 = vmatprep.subr.bf16.mxu0 %v3250_v28  ;;  %v736_v25 = vadd.f32 %v672_v23, %v324_v20  ;;  %v3262_v28 = vld [vmem:[%s5085_s2 + $0x70] sm:$0xff]   ;;  %v5150_v23 = vld [vmem:[#allocation6_spill] sm:$0xff] }
 0x15a   :  { %v4100_v13 = vpop.permute.xlu1 %297  ;;  %v4102_v47 = vpop.permute.xlu0 %231  ;;  %3079 = vmatpush3.bf16.msra.mxu0 %v3251_v51  ;;  %v347_v51 = vmul.f32 %v3574_v57, %v5147_v11 }
 0x15b   :  { %3080 = vmatprep.subr.bf16.mxu0 %v3254_v6 }
 0x15c   :  { %622 = vbcast.lane.b32.xlu1 %v3394_v12, 304  ;;  %556 = vbcast.lane.b32.xlu0 %v3473_v29, 312  ;;  %v3253_v29 = vld [vmem:[%s5085_s2 + $0x98] sm:$0xff]  }
 0x15d   :  { %3101 = vmatpush3.bf16.msra.mxu1 %v3253_v29  ;;  %v5148_v29 = vld [vmem:[#allocation7_spill] sm:$0xff] }
 0x15e   :  { %v4115_v42 = vpop.permute.xlu1 %447  ;;  %v4117_v40 = vpop.permute.xlu0 %412  ;;  %3081 = vmatpush3.bf16.msra.mxu0 %v3255_v26  ;;  %3102 = vmatprep.subr.bf16.mxu1 %v3256_v17  ;;  %v332_v6 = vmul.f32 %v3574_v57, %v5148_v29  ;;  %v5149_v26 = vld [vmem:[#allocation18_spill] sm:$0xff] }
 0x15f   :  { %3082 = vmatprep.subr.bf16.mxu0 %v3258_v63  ;;  %v725_v17 = vmul.f32 %v3565_v54, %v5149_v26  ;;  %v377_v63 = vmul.f32 %v3574_v57, %v5150_v23 }
 0x160   :  { %964 = vbcast.lane.b32.xlu1 %v3519_v35, 304  ;;  %898 = vbcast.lane.b32.xlu0 %v3478_v30, 312  ;;  %v3257_v30 = vld [vmem:[%s5085_s2 + $0xa0] sm:$0xff]   ;;  %v744_v29 = vadd.f32 %v680_v9, %v332_v6  ;;  %v3267_v9 = vld [vmem:[%s5085_s2 + $0x38] sm:$0xff]  }
 0x161   :  { %3103 = vmatpush3.bf16.msra.mxu1 %v3257_v30 }
 0x162   :  { %v4133_v7 = vpop.permute.xlu1 %579  ;;  %v4135_v46 = vpop.permute.xlu0 %513  ;;  %3083 = vmatpush3.bf16.msra.mxu0 %v3259_v49  ;;  %3104 = vmatprep.subr.bf16.mxu1 %v3260_v2  ;;  %v759_v49 = vadd.f32 %v695_v37, %v347_v51  ;;  %v5151_v2 = vld [vmem:[#allocation19_spill] sm:$0xff]  ;;  %v5152_v37 = vld [vmem:[#allocation8_spill] sm:$0xff] }
 0x163   :  { %3084 = vmatprep.subr.bf16.mxu0 %v3262_v28  ;;  %v710_v20 = vmul.f32 %v3565_v54, %v5151_v2  ;;  %v3266_v28 = vld [vmem:[%s5085_s2 + $0x78] sm:$0xff]   ;;  %v362_v51 = vmul.f32 %v3574_v57, %v5152_v37 }
 0x164   :  { %243 = vbcast.lane.b32.xlu1 %v3485_v31, 312  ;;  %1030 = vbcast.lane.b32.xlu0 %v3448_v24, 296 }
 0x165   :  { %3105 = vmatpush3.bf16.msra.mxu1 %v3261_v1  ;;  %v774_v23 = vadd.f32 %v710_v20, %v362_v51  ;;  %v3274_v51 = vld [vmem:[%s5087_s3] sm:$0xff]  }
 0x166   :  { %v821_v4 = vpop.permute.xlu1 %820  ;;  %v4157_v31 = vpop.permute.xlu0 %645  ;;  %3085 = vmatpush3.bf16.msra.mxu0 %v3263_v3  ;;  %3106 = vmatprep.subr.bf16.mxu1 %v3264_v36  ;;  %v3268_v3 = vld [vmem:[%s5085_s2 + $0xf8] sm:$0xff]   ;;  %v789_v36 = vadd.f32 %v725_v17, %v377_v63 }
 0x167   :  { %v1084_v52 = vmul.f32 %v3582_v61, %v821_v4  ;;  %3086 = vmatprep.subr.bf16.mxu0 %v3266_v28  ;;  %v3271_v17 = vld [vmem:[%s5085_s2 + $0xb8] sm:$0xff]  }
 0x168   :  { %591 = vbcast.lane.b32.xlu1 %v3385_v10, 312  ;;  %309 = vbcast.lane.b32.xlu0 %v3529_v38, 304  ;;  %v3265_v10 = vld [vmem:[%s5085_s2 + $0xb0] sm:$0xff]  }
 0x169   :  { %v4182_v30 = vadd.f32 %v1084_v52, %v736_v25  ;;  %3107 = vmatpush3.bf16.msra.mxu1 %v3265_v10 }
 0x16a   :  { %v922_v4 = vpop.permute.xlu1 %921  ;;  %v856_v11 = vpop.permute.xlu0 %855  ;;  %3087 = vmatpush3.bf16.msra.mxu0 %v3267_v9  ;;  %3108 = vmatprep.subr.bf16.mxu1 %v3268_v3 }
 0x16b   :  { %v1107_v25 = vmul.f32 %v3582_v61, %v922_v4  ;;  %v1092_v52 = vmul.f32 %v3582_v61, %v856_v11 }
 0x16c   :  { %933 = vbcast.lane.b32.xlu1 %v3502_v33, 312  ;;  %657 = vbcast.lane.b32.xlu0 %v3403_v14, 304  ;;  %v1335_v33 = vld [vmem:[%s5086_s1] sm:$0xff] }
 0x16d   :  { %v1171_v6 = vadd.f32 %v1107_v25, %v759_v49  ;;  %v4208_v26 = vadd.f32 %v1092_v52, %v744_v29  ;;  %v2903_v11 = vcombine.low %v1335_v33, %v1335_v33  ;;  %v2904_v37 = vcombine.high %v1335_v33, %v1335_v33  ;;  %v1336_v29 = vld [vmem:[%s5086_s1 + $0x8] sm:$0xff]  ;;  %v3302_v25 = vld [vmem:[%s5083_s0 + $0x4] sm:$0x7]  ;;  %3109 = vmatpush3.bf16.msra.mxu1 %v3271_v17 }
 0x16e   :  { %v1054_v2 = vpop.permute.xlu1 %1053  ;;  %v988_v4 = vpop.permute.xlu0 %987  ;;  %v4231_v52 = vadd.f32 0.5, %v3302_v25  ;;  %v2906_v59 = vcombine.high %v1336_v29, %v1336_v29  ;;  %v2905_v28 = vcombine.low %v1336_v29, %v1336_v29  ;;  %v5097_v33 = vmov 0.0  }
 0x16f   :  { %v4219_v10 = vmax.f32 %v1248_v15, %v1171_v6  ;;  %v1137_v49 = vmul.f32 %v3582_v61, %v1054_v2  ;;  %v1122_v20 = vmul.f32 %v3582_v61, %v988_v4  ;;  %1639 = vmatprep.mubr.bf16.mxu0 %v2904_v37  ;;  %3148 = vmatprep.subr.bf16.mxu0 %v5097_v33  ;;  %v3276_v4 = vld [vmem:[%s5087_s3 + $0x10] sm:$0xff]  }
 0x170   :  { %1065 = vbcast.lane.b32.xlu1 %v3489_v32, 296  ;;  %999 = vbcast.lane.b32.xlu0 %v3422_v19, 304  ;;  %v355_v29 = vmul.f32 %v3574_v57, %v4003_v21  ;;  %v3306_v21 = vld [vmem:[%s5083_s0 + $0x10] sm:$0x7]  ;;  %v2049_v8 = vmul.f32 3.0, %v4231_v52 }
 0x171   :  { %v1201_v27 = vadd.f32 %v1137_v49, %v789_v36  ;;  %v4235_v15 = vadd.f32 %v1122_v20, %v774_v23  ;;  %1640 = vmatmul.mubr.bf16.vlgmr.msra.gmra.mrb[0].mxu0 %v2903_v11  ;;  %1679 = vmatprep.mubr.bf16.mxu1 %v2906_v59  ;;  %v3303_v23 = vld [vmem:[%s5083_s0] sm:$0x7]  ;;  %v688_v11 = vmul.f32 %v3565_v54, %v4011_v41  ;;  %v3305_v41 = vld [vmem:[%s5083_s0 + $0xc] sm:$0x7]  ;;  %v3280_v52 = vld [vmem:[%s5087_s3 + $0x30] sm:$0xff]  }
 0x172   :  { %v4240_v9 = vpop.permute.xlu1 %200  ;;  %v4242_v3 = vpop.permute.xlu0 %134  ;;  %v2995_v2 = vadd.f32 0.5, %v3303_v23  ;;  %1680 = vmatmul.mubr.bf16.vlgmr.msra.gmra.mrb[0].mxu1 %v2905_v28  ;;  %3149 = vmatpush3.bf16.msra.mxu0 %v3274_v51  ;;  %v340_v49 = vmul.f32 %v3574_v57, %v4005_v60  ;;  %v2998_v20 = vadd.f32 0.5, %v3305_v41  ;;  %v2999_v51 = vadd.f32 0.5, %v3306_v21  ;;  %v3307_v41 = vld [vmem:[%s5083_s0 + $0x14] sm:$0x7] }
 0x173   :  { %v4247_v6 = vmax.f32 %v1298_v39, %v1201_v27  ;;  %3150 = vmatprep.subr.bf16.mxu0 %v5097_v33  ;;  %3168 = vmatprep.subr.bf16.mxu1 %v5097_v33  ;;  %v370_v23 = vmul.f32 %v3574_v57, %v4013_v22 }
 0x174   :  { %626 = vbcast.lane.b32.xlu1 %v3394_v12, 312  ;;  %278 = vbcast.lane.b32.xlu0 %v3510_v34, 312  ;;  %v3304_v12 = vld [vmem:[%s5083_s0 + $0x8] sm:$0x7]  ;;  %v752_v25 = vadd.f32 %v688_v11, %v340_v49 }
 0x175   :  { %v2997_v34 = vadd.f32 0.5, %v3304_v12  ;;  %3164 = vmatprep.mubr.msk.bf16.mxu0 %vm3312_vm0, %v5097_v33  ;;  %3184 = vmatprep.mubr.msk.bf16.mxu1 %vm3312_vm0, %v5097_v33 }
 0x176   :  { %v4260_v48 = vpop.permute.xlu1 %482  ;;  %v4262_v39 = vpop.permute.xlu0 %266  ;;  %3151 = vmatpush3.bf16.msra.mxu0 %v3275_v50 }
 0x177   :  { %3152 = vmatprep.subr.bf16.mxu0 %v5097_v33 }
 0x178   :  { %1034 = vbcast.lane.b32.xlu1 %v3448_v24, 304  ;;  %968 = vbcast.lane.b32.xlu0 %v3519_v35, 312  ;;  %v703_v35 = vmul.f32 %v3565_v54, %v4021_v0  ;;  %v3277_v0 = vld [vmem:[%s5087_s3 + $0x18] sm:$0xff]  }
 0x17a   :  { %v4276_v37 = vpop.permute.xlu1 %614  ;;  %v4278_v17 = vpop.permute.xlu0 %548  ;;  %3153 = vmatpush3.bf16.msra.mxu0 %v3276_v4 }
 0x17b   :  { %3154 = vmatprep.subr.bf16.mxu0 %v5097_v33 }
 0x17c   :  { %661 = vbcast.lane.b32.xlu1 %v3403_v14, 312  ;;  %313 = vbcast.lane.b32.xlu0 %v3529_v38, 312  ;;  %v718_v14 = vmul.f32 %v3565_v54, %v4019_v62  ;;  %v767_v38 = vadd.f32 %v703_v35, %v355_v29  ;;  %v3278_v62 = vld [vmem:[%s5087_s3 + $0x20] sm:$0xff]   ;;  %v3000_v29 = vadd.f32 0.5, %v3307_v41 }
 0x17e   :  { %v957_v59 = vpop.permute.xlu1 %956  ;;  %v891_v60 = vpop.permute.xlu0 %890  ;;  %3155 = vmatpush3.bf16.msra.mxu0 %v3277_v0 }
 0x17f   :  { %v1115_v27 = vmul.f32 %v3582_v61, %v957_v59  ;;  %v1100_v28 = vmul.f32 %v3582_v61, %v891_v60  ;;  %3156 = vmatprep.subr.bf16.mxu0 %v5097_v33  ;;  %v2051_v59 = vmul.f32 3.0, %v2998_v20 }
 0x180   :  { %1069 = vbcast.lane.b32.xlu1 %v3489_v32, 304  ;;  %1003 = vbcast.lane.b32.xlu0 %v3422_v19, 312  ;;  %v782_v19 = vadd.f32 %v718_v14, %v370_v23 }
 0x181   :  { %v1179_v50 = vadd.f32 %v1115_v27, %v767_v38  ;;  %v4307_v12 = vadd.f32 %v1100_v28, %v752_v25  ;;  %v2050_v25 = vmul.f32 3.0, %v2997_v34  ;;  %v2053_v38 = vmul.f32 3.0, %v3000_v29  ;;  %v3308_v27 = vld [vmem:[%s5083_s0 + $0x18] sm:$0x7] }
 0x182   :  { %v4312_v4 = vpop.permute.xlu1 %68  ;;  %v1023_v11 = vpop.permute.xlu0 %1022  ;;  %3157 = vmatpush3.bf16.msra.mxu0 %v3278_v62  ;;  %v3001_v28 = vadd.f32 0.5, %v3308_v27  ;;  %v2059_v21 = vadd.f32 0.5, %v2051_v59  ;;  %v348_v27 = vmul.f32 %v3574_v57, %v4074_v56  ;;  %v673_v56 = vmul.f32 %v3565_v54, %v4117_v40 }
 0x183   :  { %v4318_v35 = vmax.f32 %v1261_v53, %v1179_v50  ;;  %v1130_v49 = vmul.f32 %v3582_v61, %v1023_v11  ;;  %v2048_v53 = vmul.f32 3.0, %v2995_v2  ;;  %3158 = vmatprep.subr.bf16.mxu0 %v5097_v33  ;;  %v2057_v2 = vadd.f32 0.5, %v2049_v8 }
 0x184   :  { %1073 = vbcast.lane.b32.xlu1 %v3489_v32, 312  ;;  %1038 = vbcast.lane.b32.xlu0 %v3448_v24, 312  ;;  %v2052_v32 = vmul.f32 3.0, %v2999_v51  ;;  %v2058_v20 = vadd.f32 0.5, %v2050_v25  ;;  %v4352_v62 = vadd.f32 0.5, %v2053_v38  ;;  %v2054_v11 = vmul.f32 3.0, %v3001_v28 }
 0x185   :  { %v4328_v0 = vadd.f32 %v1130_v49, %v782_v19  ;;  %v2056_v34 = vadd.f32 0.5, %v2048_v53  ;;  %v3281_v19 = vld [vmem:[%s5087_s3 + $0x38] sm:$0xff]   ;;  %v2065_v49 = vfloor.f32 %v2057_v2  ;;  %v325_v38 = vmul.f32 %v3574_v57, %v4050_v55 }
 0x186   :  { %v4334_v60 = vpop.permute.xlu1 %169  ;;  %v4336_v14 = vpop.permute.xlu0 %103  ;;  %3159 = vmatpush3.bf16.msra.mxu0 %v3279_v45  ;;  %v2060_v50 = vadd.f32 0.5, %v2052_v32  ;;  %v2066_v29 = vfloor.f32 %v2058_v20  ;;  %v2067_v45 = vfloor.f32 %v2059_v21  ;;  %v2069_v59 = vfloor.f32 %v4352_v62 }
 0x187   :  { %3160 = vmatprep.subr.bf16.mxu0 %v5097_v33  ;;  %v2064_v41 = vfloor.f32 %v2056_v34  ;;  %v4367_v32 = vadd.f32 0.5, %v2054_v11  ;;  %v333_v28 = vmul.f32 %v3574_v57, %v4076_v18  ;;  %v2073_v20 = vmax.f32 %v2065_v49, 0.0 }
 0x188   :  { %v2068_v25 = vfloor.f32 %v2060_v50  ;;  %v2074_v21 = vmax.f32 %v2066_v29, 0.0  ;;  %v2075_v50 = vmax.f32 %v2067_v45, 0.0  ;;  %v681_v55 = vmul.f32 %v3565_v54, %v4115_v42 }
 0x189   :  { %v2072_v34 = vmax.f32 %v2064_v41, 0.0  ;;  %v711_v18 = vmul.f32 %v3565_v54, %v4133_v7  ;;  %v363_v49 = vmul.f32 %v3574_v57, %v4102_v47  ;;  %v696_v41 = vmul.f32 %v3565_v54, %v4135_v46 }
 0x18a   :  { %v4347_v23 = vpop.permute.xlu1 %301  ;;  %v4349_v51 = vpop.permute.xlu0 %235  ;;  %3161 = vmatpush3.bf16.msra.mxu0 %v3280_v52  ;;  %v2076_v62 = vmax.f32 %v2068_v25, 0.0  ;;  %v2082_v24 = vmin.f32 %v2074_v21, 3.0  ;;  %v2083_v22 = vmin.f32 %v2075_v50, 3.0  ;;  %v726_v42 = vmul.f32 %v3565_v54, %v4157_v31 }
 0x18b   :  { %5153 = vst [vmem:[#allocation10_spill] sm:$0xff] %v4347_v23  ;;  %5154 = vst [vmem:[#allocation14_spill] sm:$0xff] %v4349_v51  ;;  %3162 = vmatprep.subr.bf16.mxu0 %v5097_v33  ;;  %v2080_v11 = vmin.f32 %v2072_v34, 3.0  ;;  %v737_v21 = vadd.f32 %v673_v56, %v325_v38  ;;  %v745_v36 = vadd.f32 %v681_v55, %v333_v28 }
 0x18c   :  { %v2084_v29 = vmin.f32 %v2076_v62, 3.0  ;;  %v3224_v25 = vtrunc.f32 %v2082_v24  ;;  %v3226_v34 = vtrunc.f32 %v2083_v22  ;;  %v775_v46 = vadd.f32 %v711_v18, %v363_v49 }
 0x18d   :  { %v760_v31 = vadd.f32 %v696_v41, %v348_v27 }
 0x18e   :  { %v4359_v8 = vpop.permute.xlu1 %451  ;;  %v4361_v53 = vpop.permute.xlu0 %416  ;;  %3163 = vmatpush3.bf16.msra.mxu0 %v3281_v19  ;;  %v2081_v19 = vmin.f32 %v2073_v20, 3.0  ;;  %v378_v20 = vmul.f32 %v3574_v57, %v4100_v13  ;;  %v3228_v50 = vtrunc.f32 %v2084_v29  ;;  %v3225_v23 = vcvt.f32.s32 %v3224_v25 }
 0x18f   :  { %3188 = vmatprep.subr.bf16.mxu0 %v5097_v33  ;;  %v3220_v33 = vtrunc.f32 %v2080_v11  ;;  %v4397_v22 = vcvt.f32.s32 %v3226_v34  ;;  %v5157_v13 = vmax.f32 %v3976_v16, %v4182_v30  ;;  %v5158_v34 = vmax.f32 %v3971_v44, %v4208_v26 }
 0x190   :  { %v3222_v7 = vtrunc.f32 %v2081_v19  ;;  %v790_v62 = vadd.f32 %v726_v42, %v378_v20  ;;  %v4406_v27 = vcvt.f32.s32 %v3228_v50  ;;  %v2130_v25 = vrot.slane %v3225_v23, 2 }
 0x191   :  { %v3221_v63 = vcvt.f32.s32 %v3220_v33  ;;  %v2107_v50 = vmul.u32 4, %v4397_v22  ;;  %v2070_v44 = vfloor.f32 %v4367_v32 }
 0x192   :  { %v4375_v52 = vpop.permute.xlu1 %583  ;;  %v4377_v2 = vpop.permute.xlu0 %517  ;;  %v3223_v1 = vcvt.f32.s32 %v3222_v7 }
 0x193   :  { %5155 = vst [vmem:[#allocation16_spill] sm:$0xff] %v4375_v52  ;;  %v2096_v19 = vmul.u32 16, %v3221_v63  ;;  %v2104_v24 = vmul.u32 4, %v3221_v63  ;;  %v2077_v52 = vmax.f32 %v2069_v59, 0.0  ;;  %v2128_v56 = vrot.slane %v3221_v63, 2 }
 0x194   :  { %v2097_v18 = vmul.u32 16, %v3223_v1  ;;  %v2105_v49 = vmul.u32 4, %v3223_v1  ;;  %v2129_v29 = vrot.slane %v3223_v1, 2 }
 0x195   :  { %v2112_v55 = vrot.slane %v2104_v24, 1  ;;  %v2106_v59 = vmul.u32 4, %v3225_v23  ;;  %v2085_v32 = vmin.f32 %v2077_v52, 3.0  ;;  %v2100_v52 = vmul.u32 16, %v4406_v27 }
 0x196   :  { %v825_v45 = vpop.permute.xlu1 %824  ;;  %v4392_v40 = vpop.permute.xlu0 %649  ;;  %v2113_v30 = vrot.slane %v2105_v49, 1 }
 0x197   :  { %5156 = vst [vmem:[#allocation9_spill] sm:$0xff] %v4392_v40  ;;  %v1085_v47 = vmul.f32 %v3582_v61, %v825_v45  ;;  %v2120_v16 = vadd.s32 %v2112_v55, %v2096_v19 }
 0x199   :  { %v1149_v51 = vadd.f32 %v1085_v47, %v737_v21  ;;  %v2136_v1 = vadd.s32 %v2128_v56, %v2120_v16  ;;  %v2121_v21 = vadd.s32 %v2113_v30, %v2097_v18  ;;  %v2114_v47 = vrot.slane %v2106_v59, 1 }
 0x19a   :  { %v926_v40 = vpop.permute.xlu1 %925  ;;  %v860_v11 = vpop.permute.xlu0 %859  ;;  %v5160_v18 = vmax.f32 %v3991_v5, %v4235_v15  ;;  %v2108_v59 = vmul.u32 4, %v4406_v27  ;;  %v2131_v15 = vrot.slane %v4397_v22, 2  ;;  %v3230_v16 = vtrunc.f32 %v2085_v32 }
 0x19b   :  { %v4402_v38 = vmax.f32 %v5157_v13, %v1149_v51  ;;  %v1108_v28 = vmul.f32 %v3582_v61, %v926_v40  ;;  %v1093_v33 = vmul.f32 %v3582_v61, %v860_v11  ;;  %v2098_v51 = vmul.u32 16, %v3225_v23  ;;  %v3309_v23 = vld [vmem:[%s5083_s0 + $0x1c] sm:$0x7]  ;;  %v5159_v13 = vld [vmem:[#allocation3_spill] sm:$0xff] }
 0x19d   :  { %v4408_v41 = vadd.f32 %v1108_v28, %v760_v31  ;;  %v1157_v42 = vadd.f32 %v1093_v33, %v745_v36  ;;  %v3002_v31 = vadd.f32 0.5, %v3309_v23  ;;  %v4431_v28 = vrot.slane %v2136_v1, %v5159_v13 }
 0x19e   :  { %v1058_v45 = vpop.permute.xlu1 %1057  ;;  %v992_v7 = vpop.permute.xlu0 %991  ;;  %v2137_v33 = vadd.s32 %v2129_v29, %v2121_v21  ;;  %v2122_v55 = vadd.s32 %v2114_v47, %v2098_v51  ;;  %v2115_v29 = vrot.slane %v2107_v50, 1  ;;  %v704_v21 = vmul.f32 %v3565_v54, %v4278_v17 }
 0x19f   :  { %v1250_v40 = vmax.f32 %v4219_v10, %v4408_v41  ;;  %v4415_v63 = vmax.f32 %v5158_v34, %v1157_v42  ;;  %v1138_v20 = vmul.f32 %v3582_v61, %v1058_v45  ;;  %v1123_v36 = vmul.f32 %v3582_v61, %v992_v7  ;;  %2151 = vbcast.lane.b32.xlu0 %v4431_v28, 256 }
 0x1a0   :  { %2155 = vbcast.lane.b32.xlu1 %v4431_v28, 264  ;;  %v4444_v49 = vrot.slane %v2137_v33, %v5159_v13  ;;  %v2138_v42 = vadd.s32 %v2130_v25, %v2122_v55  ;;  %v2055_v45 = vmul.f32 3.0, %v3002_v31  ;;  %v2116_v25 = vrot.slane %v2108_v59, 1 }
 0x1a1   :  { %v4423_v11 = vadd.f32 %v1138_v20, %v790_v62  ;;  %v1187_v19 = vadd.f32 %v1123_v36, %v775_v46  ;;  %v2099_v46 = vmul.u32 16, %v4397_v22  ;;  %v2078_v34 = vmax.f32 %v2070_v44, 0.0 }
 0x1a2   :  { %v4426_v26 = vpop.permute.xlu1 %204  ;;  %v4428_v24 = vpop.permute.xlu0 %138  ;;  %v4456_v30 = vrot.slane %v2138_v42, %v5159_v13  ;;  %v2063_v20 = vadd.f32 0.5, %v2055_v45  ;;  %v689_v22 = vmul.f32 %v3565_v54, %v4260_v48  ;;  %v3231_v47 = vcvt.f32.s32 %v3230_v16 }
 0x1a3   :  { %v1300_v56 = vmax.f32 %v4247_v6, %v4423_v11  ;;  %v4438_v62 = vmax.f32 %v5160_v18, %v1187_v19  ;;  %2186 = vbcast.lane.b32.xlu0 %v4444_v49, 256  ;;  %v2123_v51 = vadd.s32 %v2115_v29, %v2099_v46  ;;  %v2124_v23 = vadd.s32 %v2116_v25, %v2100_v52 }
 0x1a4   :  { %2190 = vbcast.lane.b32.xlu1 %v4444_v49, 264  ;;  %v2132_v31 = vrot.slane %v4406_v27, 2  ;;  %v2086_v19 = vmin.f32 %v2078_v34, 3.0  ;;  %v356_v44 = vmul.f32 %v3574_v57, %v4240_v9  ;;  %v341_v33 = vmul.f32 %v3574_v57, %v4242_v3 }
 0x1a5   :  { %v2139_v50 = vadd.s32 %v2131_v15, %v2123_v51  ;;  %v2071_v48 = vfloor.f32 %v2063_v20  ;;  %v371_v17 = vmul.f32 %v3574_v57, %v4262_v39  ;;  %v719_v55 = vmul.f32 %v3565_v54, %v4276_v37 }
 0x1a6   :  { %v4447_v7 = vpop.permute.xlu1 %486  ;;  %v4449_v5 = vpop.permute.xlu0 %270  ;;  %v753_v32 = vadd.f32 %v689_v22, %v341_v33  ;;  %v768_v42 = vadd.f32 %v704_v21, %v356_v44  ;;  %v2140_v3 = vadd.s32 %v2132_v31, %v2124_v23  ;;  %v2109_v39 = vmul.u32 4, %v3231_v47 }
 0x1a7   :  { %2221 = vbcast.lane.b32.xlu0 %v4456_v30, 256  ;;  %v4482_v9 = vrot.slane %v2139_v50, %v5159_v13  ;;  %v3232_v59 = vtrunc.f32 %v2086_v19  ;;  %v783_v15 = vadd.f32 %v719_v55, %v371_v17  ;;  %v5161_v25 = vmax.f32 %v4060_v58, %v4307_v12 }
 0x1a8   :  { %2225 = vbcast.lane.b32.xlu1 %v4456_v30, 264  ;;  %v2101_v22 = vmul.u32 16, %v3231_v47  ;;  %v4499_v21 = vrot.slane %v2140_v3, %v5159_v13  ;;  %v2117_v50 = vrot.slane %v2109_v39, 1  ;;  %v2079_v31 = vmax.f32 %v2071_v48, 0.0 }
 0x1a9   :  { %v3233_v23 = vcvt.f32.s32 %v3232_v59  ;;  %v5162_v58 = vmax.f32 %v4084_v43, %v4328_v0  ;;  %v2133_v55 = vrot.slane %v3231_v47, 2  ;;  %v326_v47 = vmul.f32 %v3574_v57, %v4312_v4 }
 0x1aa   :  { %v4458_v36 = vpop.permute.xlu1 %618  ;;  %v4460_v1 = vpop.permute.xlu0 %552  ;;  %v2125_v17 = vadd.s32 %v2117_v50, %v2101_v22  ;;  %v682_v3 = vmul.f32 %v3565_v54, %v4359_v8  ;;  %v690_v6 = vmul.f32 %v3565_v54, %v4447_v7 }
 0x1ab   :  { %2159 = vbcast.lane.b32.xlu0 %v4431_v28, 272  ;;  %v2102_v0 = vmul.u32 16, %v3233_v23  ;;  %v705_v11 = vmul.f32 %v3565_v54, %v4460_v1 }
 0x1ac   :  { %2194 = vbcast.lane.b32.xlu1 %v4444_v49, 272  ;;  %v2141_v43 = vadd.s32 %v2133_v55, %v2125_v17 }
 0x1ae   :  { %v961_v18 = vpop.permute.xlu1 %960  ;;  %v895_v46 = vpop.permute.xlu0 %894  ;;  %v4534_v4 = vrot.slane %v2141_v43, %v5159_v13  ;;  %v5165_v43 = vld [vmem:[#allocation10_spill] sm:$0xff] }
 0x1af   :  { %v1116_v27 = vmul.f32 %v3582_v61, %v961_v18  ;;  %v1101_v29 = vmul.f32 %v3582_v61, %v895_v46  ;;  %2256 = vbcast.lane.b32.xlu0 %v4482_v9, 256  ;;  %v2110_v18 = vmul.u32 4, %v3233_v23  ;;  %v2087_v46 = vmin.f32 %v2079_v31, 3.0  ;;  %v5163_v31 = vld [vmem:[#allocation16_spill] sm:$0xff] }
 0x1b0   :  { %2260 = vbcast.lane.b32.xlu1 %v4482_v9, 264 }
 0x1b1   :  { %v4484_v45 = vadd.f32 %v1116_v27, %v768_v42  ;;  %v1165_v37 = vadd.f32 %v1101_v29, %v753_v32  ;;  %v674_v42 = vmul.f32 %v3565_v54, %v4361_v53  ;;  %v2118_v27 = vrot.slane %v2110_v18, 1 }
 0x1b2   :  { %v4486_v52 = vpop.permute.xlu1 %173  ;;  %v1027_v16 = vpop.permute.xlu0 %1026  ;;  %v3234_v29 = vtrunc.f32 %v2087_v46  ;;  %v334_v53 = vmul.f32 %v3574_v57, %v4336_v14  ;;  %v349_v14 = vmul.f32 %v3574_v57, %v4334_v60  ;;  %v379_v60 = vmul.f32 %v3574_v57, %v5165_v43 }
 0x1b3   :  { %v1263_v51 = vmax.f32 %v4318_v35, %v4484_v45  ;;  %v4493_v34 = vmax.f32 %v5161_v25, %v1165_v37  ;;  %v1131_v20 = vmul.f32 %v3582_v61, %v1027_v16  ;;  %2229 = vbcast.lane.b32.xlu0 %v4456_v30, 272  ;;  %v738_v37 = vadd.f32 %v674_v42, %v326_v47 }
 0x1b4   :  { %2291 = vbcast.lane.b32.xlu1 %v4499_v21, 256  ;;  %v2126_v8 = vadd.s32 %v2118_v27, %v2102_v0  ;;  %v2134_v25 = vrot.slane %v3233_v23, 2  ;;  %v746_v50 = vadd.f32 %v682_v3, %v334_v53  ;;  %v5166_v0 = vld [vmem:[#allocation14_spill] sm:$0xff] }
 0x1b5   :  { %v1195_v19 = vadd.f32 %v1131_v20, %v783_v15  ;;  %v697_v15 = vmul.f32 %v3565_v54, %v4377_v2  ;;  %v4536_v20 = vcvt.f32.s32 %v3234_v29  ;;  %v712_v2 = vmul.f32 %v3565_v54, %v5163_v31 }
 0x1b6   :  { %v4501_v44 = vpop.permute.xlu1 %305  ;;  %v4503_v33 = vpop.permute.xlu0 %239  ;;  %v364_v27 = vmul.f32 %v3574_v57, %v5166_v0  ;;  %v2142_v29 = vadd.s32 %v2134_v25, %v2126_v8 }
 0x1b7   :  { %v4508_v12 = vmax.f32 %v5162_v58, %v1195_v19  ;;  %2295 = vbcast.lane.b32.xlu0 %v4499_v21, 264  ;;  %v5164_v19 = vld [vmem:[#allocation9_spill] sm:$0xff]  ;;  %v761_v18 = vadd.f32 %v697_v15, %v349_v14  ;;  %v2111_v47 = vmul.u32 4, %v4536_v20 }
 0x1b8   :  { %2163 = vbcast.lane.b32.xlu1 %v4431_v28, 280  ;;  %v727_v58 = vmul.f32 %v3565_v54, %v5164_v19  ;;  %v776_v53 = vadd.f32 %v712_v2, %v364_v27  ;;  %v4565_v25 = vrot.slane %v2142_v29, %v5159_v13  ;;  %v3283_v29 = vld [vmem:[%s5087_s3 + $0x48] sm:$0xff]  }
 0x1b9   :  { %v2119_v2 = vrot.slane %v2111_v47, 1 }
 0x1ba   :  { %v4512_v32 = vpop.permute.xlu1 %587  ;;  %v4514_v48 = vpop.permute.xlu0 %521 }
 0x1bb   :  { %2198 = vbcast.lane.b32.xlu0 %v4444_v49, 280 }
 0x1bc   :  { %2264 = vbcast.lane.b32.xlu1 %v4482_v9, 272 }
 0x1be   :  { %v829_v39 = vpop.permute.xlu1 %828  ;;  %v4524_v59 = vpop.permute.xlu0 %653 }
 0x1bf   :  { %v1086_v16 = vmul.f32 %v3582_v61, %v829_v39  ;;  %2326 = vbcast.lane.b32.xlu0 %v4534_v4, 256 }
 0x1c0   :  { %2330 = vbcast.lane.b32.xlu1 %v4534_v4, 264 }
 0x1c1   :  { %v1150_v22 = vadd.f32 %v1086_v16, %v738_v37  ;;  %v791_v37 = vadd.f32 %v727_v58, %v379_v60  ;;  %v2135_v60 = vrot.slane %v4536_v20, 2 }
 0x1c2   :  { %v930_v17 = vpop.permute.xlu1 %929  ;;  %v864_v55 = vpop.permute.xlu0 %863 }
 0x1c3   :  { %v1213_v46 = vmax.f32 %v4402_v38, %v1150_v22  ;;  %v1109_v23 = vmul.f32 %v3582_v61, %v930_v17  ;;  %v1094_v42 = vmul.f32 %v3582_v61, %v864_v55  ;;  %2233 = vbcast.lane.b32.xlu0 %v4456_v30, 280  ;;  %v3282_v55 = vld [vmem:[%s5087_s3 + $0x40] sm:$0xff]  }
 0x1c4   :  { %2299 = vbcast.lane.b32.xlu1 %v4499_v21, 272  ;;  %3169 = vmatpush3.bf16.msra.mxu1 %v3282_v55  ;;  %v3285_v55 = vld [vmem:[%s5087_s3 + $0x58] sm:$0xff]  }
 0x1c5   :  { %v1214_v3 = vrot.slane %v1213_v46, 4  ;;  %v1173_v39 = vadd.f32 %v1109_v23, %v761_v18  ;;  %v1158_v38 = vadd.f32 %v1094_v42, %v746_v50  ;;  %v2103_v50 = vmul.u32 16, %v4536_v20 }
 0x1c6   :  { %v1062_v15 = vpop.permute.xlu1 %1061  ;;  %v996_v16 = vpop.permute.xlu0 %995 }
 0x1c7   :  { %v1215_v14 = vmax.f32 %v1213_v46, %v1214_v3  ;;  %v4557_v22 = vmax.f32 %v1250_v40, %v1173_v39  ;;  %v1226_v31 = vmax.f32 %v4415_v63, %v1158_v38  ;;  %v1139_v19 = vmul.f32 %v3582_v61, %v1062_v15  ;;  %2361 = vbcast.lane.b32.xlu0 %v4565_v25, 256 }
 0x1c8   :  { %v1124_v8 = vmul.f32 %v3582_v61, %v996_v16  ;;  %2365 = vbcast.lane.b32.xlu1 %v4565_v25, 264  ;;  %v2127_v43 = vadd.s32 %v2119_v2, %v2103_v50  ;;  %v5167_v3 = vmov 0.0   ;;  %v357_v38 = vmul.f32 %v3574_v57, %v4426_v26 }
 0x1c9   :  { %v1216_v58 = vrot.slane %v1215_v14, 2  ;;  %v1227_v10 = vrot.slane %v1226_v31, 4  ;;  %v1203_v41 = vadd.f32 %v1139_v19, %v791_v37  ;;  %3170 = vmatprep.subr.bf16.mxu1 %v5167_v3  ;;  %v3284_v37 = vld [vmem:[%s5087_s3 + $0x50] sm:$0xff]   ;;  %v720_v50 = vmul.f32 %v3565_v54, %v4458_v36 }
 0x1ca   :  { %v4568_v40 = vadd.f32 %v1124_v8, %v776_v53  ;;  %v4570_v63 = vpop.permute.xlu1 %274  ;;  %v4572_v17 = vpop.permute.xlu0 %208  ;;  %v342_v53 = vmul.f32 %v3574_v57, %v4428_v24  ;;  %v2143_v7 = vadd.s32 %v2135_v60, %v2127_v43  ;;  %3171 = vmatpush3.bf16.msra.mxu1 %v3283_v29  ;;  %v769_v16 = vadd.f32 %v705_v11, %v357_v38  ;;  %v3286_v11 = vld [vmem:[%s5087_s3 + $0x60] sm:$0xff]  }
 0x1cb   :  { %v1217_v18 = vmax.f32 %v1215_v14, %v1216_v58  ;;  %v1228_v46 = vmax.f32 %v1226_v31, %v1227_v10  ;;  %v4580_v23 = vmax.f32 %v1300_v56, %v1203_v41  ;;  %2167 = vbcast.lane.b32.xlu0 %v4431_v28, 288  ;;  %3172 = vmatprep.subr.bf16.mxu1 %v5167_v3 }
 0x1cc   :  { %v1276_v42 = vmax.f32 %v4438_v62, %v4568_v40  ;;  %2202 = vbcast.lane.b32.xlu1 %v4444_v49, 288  ;;  %v754_v15 = vadd.f32 %v690_v6, %v342_v53  ;;  %v4616_v2 = vrot.slane %v2143_v7, %v5159_v13  ;;  %v350_v38 = vmul.f32 %v3574_v57, %v4486_v52  ;;  %v3287_v7 = vld [vmem:[%s5087_s3 + $0x68] sm:$0xff]  }
 0x1cd   :  { %v1218_v0 = vrot.slane %v1217_v18, 1  ;;  %v1229_v27 = vrot.slane %v1228_v46, 2 }
 0x1ce   :  { %v4594_v56 = vpop.permute.xlu1 %622  ;;  %v4596_v47 = vpop.permute.xlu0 %556  ;;  %3173 = vmatpush3.bf16.msra.mxu1 %v3284_v37 }
 0x1cf   :  { %v1219_v20 = vmax.f32 %v1217_v18, %v1218_v0  ;;  %v1230_v39 = vmax.f32 %v1228_v46, %v1229_v27  ;;  %2268 = vbcast.lane.b32.xlu0 %v4482_v9, 280  ;;  %v372_v18 = vmul.f32 %v3574_v57, %v4449_v5  ;;  %3174 = vmatprep.subr.bf16.mxu1 %v5167_v3 }
 0x1d0   :  { %2334 = vbcast.lane.b32.xlu1 %v4534_v4, 272 }
 0x1d1   :  { %v1231_v1 = vrot.slane %v1230_v39, 1  ;;  %v1311_v26 = vpack.c.bf16 %v1219_v20, %v1219_v20  ;;  %v784_v27 = vadd.f32 %v720_v50, %v372_v18 }
 0x1d2   :  { %v965_v14 = vpop.permute.xlu1 %964  ;;  %v899_v31 = vpop.permute.xlu0 %898  ;;  %3175 = vmatpush3.bf16.msra.mxu1 %v3285_v55 }
 0x1d3   :  { %v1232_v19 = vmax.f32 %v1230_v39, %v1231_v1  ;;  %v1117_v24 = vmul.f32 %v3582_v61, %v965_v14  ;;  %v1102_v8 = vmul.f32 %v3582_v61, %v899_v31  ;;  %v1695_v43 = vunpack.c.l.b16 %v1311_v26  ;;  %2396 = vbcast.lane.b32.xlu0 %v4616_v2, 256  ;;  %3176 = vmatprep.subr.bf16.mxu1 %v5167_v3 }
 0x1d4   :  { %2400 = vbcast.lane.b32.xlu1 %v4616_v2, 264  ;;  %v728_v1 = vmul.f32 %v3565_v54, %v4524_v59  ;;  %v380_v31 = vmul.f32 %v3574_v57, %v4501_v44  ;;  %v365_v26 = vmul.f32 %v3574_v57, %v4503_v33 }
 0x1d5   :  { %v1312_v58 = vpack.c.bf16 %v1232_v19, %v1232_v19  ;;  %v1181_v10 = vadd.f32 %v1117_v24, %v769_v16  ;;  %v1166_v41 = vadd.f32 %v1102_v8, %v754_v15 }
 0x1d6   :  { %v4623_v36 = vpop.permute.xlu1 %243  ;;  %v1031_v46 = vpop.permute.xlu0 %1030  ;;  %3177 = vmatpush3.bf16.msra.mxu1 %v3286_v11  ;;  %v792_v24 = vadd.f32 %v728_v1, %v380_v31 }
 0x1d7   :  { %v1696_v13 = vunpack.c.l.b16 %v1312_v58  ;;  %v4629_v60 = vmax.f32 %v1263_v51, %v1181_v10  ;;  %v1239_v0 = vmax.f32 %v4493_v34, %v1166_v41  ;;  %v1132_v29 = vmul.f32 %v3582_v61, %v1031_v46  ;;  %2237 = vbcast.lane.b32.xlu0 %v4456_v30, 288  ;;  %3178 = vmatprep.subr.bf16.mxu1 %v5167_v3 }
 0x1d8   :  { %v698_v34 = vmul.f32 %v3565_v54, %v4514_v48  ;;  %2303 = vbcast.lane.b32.xlu1 %v4499_v21, 280  ;;  %v713_v48 = vmul.f32 %v3565_v54, %v4512_v32 }
 0x1d9   :  { %v1704_v5 = vsel %vm1703_vm1, %v1696_v13, %v1695_v43  ;;  %v1240_v6 = vrot.slane %v1239_v0, 4  ;;  %v4639_v35 = vadd.f32 %v1132_v29, %v784_v27  ;;  %v721_v43 = vmul.f32 %v3565_v54, %v4594_v56 }
 0x1da   :  { %v4641_v45 = vpop.permute.xlu1 %591  ;;  %v4643_v51 = vpop.permute.xlu0 %309  ;;  %v762_v16 = vadd.f32 %v698_v34, %v350_v38  ;;  %3179 = vmatpush3.bf16.msra.mxu1 %v3287_v7  ;;  %v777_v19 = vadd.f32 %v713_v48, %v365_v26  ;;  %v706_v13 = vmul.f32 %v3565_v54, %v4596_v47  ;;  %v373_v34 = vmul.f32 %v3574_v57, %v4570_v63 }
 0x1db   :  { %v1241_v20 = vmax.f32 %v1239_v0, %v1240_v6  ;;  %v1289_v39 = vmax.f32 %v4508_v12, %v4639_v35  ;;  %2369 = vbcast.lane.b32.xlu0 %v4565_v25, 272  ;;  %3180 = vmatprep.subr.bf16.mxu1 %v5167_v3  ;;  %v358_v56 = vmul.f32 %v3574_v57, %v4572_v17 }
 0x1dc   :  { %2171 = vbcast.lane.b32.xlu1 %v4431_v28, 296  ;;  %v785_v38 = vadd.f32 %v721_v43, %v373_v34  ;;  %v714_v17 = vmul.f32 %v3565_v54, %v4641_v45  ;;  %v366_v26 = vmul.f32 %v3574_v57, %v4623_v36 }
 0x1dd   :  { %v1242_v53 = vrot.slane %v1241_v20, 2  ;;  %v770_v7 = vadd.f32 %v706_v13, %v358_v56 }
 0x1de   :  { %v934_v37 = vpop.permute.xlu1 %933  ;;  %v658_v15 = vpop.permute.xlu0 %657 }
 0x1df   :  { %v1243_v14 = vmax.f32 %v1241_v20, %v1242_v53  ;;  %v1110_v52 = vmul.f32 %v3582_v61, %v934_v37  ;;  %2206 = vbcast.lane.b32.xlu0 %v4444_v49, 296 }
 0x1e0   :  { %2272 = vbcast.lane.b32.xlu1 %v4482_v9, 288 }
 0x1e1   :  { %v1244_v32 = vrot.slane %v1243_v14, 1  ;;  %v1174_v59 = vadd.f32 %v1110_v52, %v762_v16 }
 0x1e2   :  { %v1066_v8 = vpop.permute.xlu1 %1065  ;;  %v1000_v50 = vpop.permute.xlu0 %999 }
 0x1e3   :  { %v1245_v58 = vmax.f32 %v1243_v14, %v1244_v32  ;;  %v1252_v10 = vmax.f32 %v4557_v22, %v1174_v59  ;;  %v1140_v44 = vmul.f32 %v3582_v61, %v1066_v8  ;;  %v1125_v33 = vmul.f32 %v3582_v61, %v1000_v50  ;;  %2338 = vbcast.lane.b32.xlu0 %v4534_v4, 280 }
 0x1e4   :  { %2404 = vbcast.lane.b32.xlu1 %v4616_v2, 272  ;;  %v381_v32 = vmul.f32 %v3574_v57, %v4643_v51  ;;  %v778_v59 = vadd.f32 %v714_v17, %v366_v26 }
 0x1e5   :  { %v1313_v41 = vpack.c.bf16 %v1245_v58, %v1245_v58  ;;  %v1253_v55 = vrot.slane %v1252_v10, 4  ;;  %v4675_v18 = vadd.f32 %v1140_v44, %v792_v24  ;;  %v1189_v46 = vadd.f32 %v1125_v33, %v777_v19 }
 0x1e6   :  { %v627_v22 = vpop.permute.xlu1 %626  ;;  %v279_v0 = vpop.permute.xlu0 %278 }
 0x1e7   :  { %v1697_v27 = vunpack.c.l.b16 %v1313_v41  ;;  %v1254_v29 = vmax.f32 %v1252_v10, %v1253_v55  ;;  %v1302_v6 = vmax.f32 %v4580_v23, %v4675_v18  ;;  %v1277_v11 = vmax.f32 %v1276_v42, %v1189_v46  ;;  %2241 = vbcast.lane.b32.xlu0 %v4456_v30, 296 }
 0x1e8   :  { %2307 = vbcast.lane.b32.xlu1 %v4499_v21, 288  ;;  %v722_v50 = vmul.f32 %v3565_v54, %v627_v22  ;;  %v374_v58 = vmul.f32 %v3574_v57, %v279_v0 }
 0x1e9   :  { %v1706_v47 = vsel %vm1705_vm2, %v1697_v27, %v1704_v5  ;;  %v1255_v20 = vrot.slane %v1254_v29, 2  ;;  %v729_v5 = vmul.f32 %v3565_v54, %v658_v15 }
 0x1ea   :  { %v1035_v53 = vpop.permute.xlu1 %1034  ;;  %v969_v23 = vpop.permute.xlu0 %968 }
 0x1eb   :  { %v1256_v48 = vmax.f32 %v1254_v29, %v1255_v20  ;;  %v1133_v62 = vmul.f32 %v3582_v61, %v1035_v53  ;;  %v1118_v40 = vmul.f32 %v3582_v61, %v969_v23  ;;  %2373 = vbcast.lane.b32.xlu0 %v4565_v25, 280  ;;  %v793_v19 = vadd.f32 %v729_v5, %v381_v32 }
 0x1ec   :  { %2175 = vbcast.lane.b32.xlu1 %v4431_v28, 304 }
 0x1ed   :  { %v1257_v63 = vrot.slane %v1256_v48, 1  ;;  %v1197_v42 = vadd.f32 %v1133_v62, %v785_v38  ;;  %v1182_v1 = vadd.f32 %v1118_v40, %v770_v7 }
 0x1ee   :  { %v662_v37 = vpop.permute.xlu1 %661  ;;  %v314_v16 = vpop.permute.xlu0 %313 }
 0x1ef   :  { %v1258_v14 = vmax.f32 %v1256_v48, %v1257_v63  ;;  %v1290_v52 = vmax.f32 %v1289_v39, %v1197_v42  ;;  %v1265_v31 = vmax.f32 %v4629_v60, %v1182_v1  ;;  %v730_v12 = vmul.f32 %v3565_v54, %v662_v37  ;;  %2210 = vbcast.lane.b32.xlu0 %v4444_v49, 304 }
 0x1f0   :  { %v382_v35 = vmul.f32 %v3574_v57, %v314_v16  ;;  %2276 = vbcast.lane.b32.xlu1 %v4482_v9, 296  ;;  %v786_v54 = vadd.f32 %v722_v50, %v374_v58 }
 0x1f1   :  { %v1314_v45 = vpack.c.bf16 %v1258_v14, %v1258_v14  ;;  %v1266_v15 = vrot.slane %v1265_v31, 4 }
 0x1f2   :  { %v1070_v60 = vpop.permute.xlu1 %1069  ;;  %v1004_v39 = vpop.permute.xlu0 %1003  ;;  %v794_v55 = vadd.f32 %v730_v12, %v382_v35 }
 0x1f3   :  { %v1698_v24 = vunpack.c.l.b16 %v1314_v45  ;;  %v1267_v36 = vmax.f32 %v1265_v31, %v1266_v15  ;;  %v1141_v8 = vmul.f32 %v3582_v61, %v1070_v60  ;;  %v1126_v51 = vmul.f32 %v3582_v61, %v1004_v39  ;;  %2342 = vbcast.lane.b32.xlu0 %v4534_v4, 288 }
 0x1f4   :  { %2408 = vbcast.lane.b32.xlu1 %v4616_v2, 280  ;;  %v5168_v39 = vlaneseq }
 0x1f5   :  { %v1708_v10 = vsel %vm1707_vm3, %v1698_v24, %v1706_v47  ;;  %v1268_v44 = vrot.slane %v1267_v36, 2  ;;  %v1205_v33 = vadd.f32 %v1141_v8, %v793_v19  ;;  %v1190_v41 = vadd.f32 %v1126_v51, %v778_v59 }
 0x1f6   :  { %v1074_v18 = vpop.permute.xlu1 %1073  ;;  %v1039_v46 = vpop.permute.xlu0 %1038  ;;  %v4740_v24 = vand.u32 127, %v5168_v39 }
 0x1f7   :  { %v1269_v43 = vmax.f32 %v1267_v36, %v1268_v44  ;;  %v1303_v13 = vmax.f32 %v1302_v6, %v1205_v33  ;;  %v1278_v27 = vmax.f32 %v1277_v11, %v1190_v41  ;;  %v1142_v29 = vmul.f32 %v3582_v61, %v1074_v18  ;;  %2245 = vbcast.lane.b32.xlu0 %v4456_v30, 304 }
 0x1f8   :  { %v1134_v57 = vmul.f32 %v3582_v61, %v1039_v46  ;;  %2311 = vbcast.lane.b32.xlu1 %v4499_v21, 296 }
 0x1f9   :  { %v1270_v22 = vrot.slane %v1269_v43, 1  ;;  %v1279_v0 = vrot.slane %v1278_v27, 4  ;;  %v1206_v34 = vadd.f32 %v1142_v29, %v794_v55 }
 0x1fa   :  { %v1198_v56 = vadd.f32 %v1134_v57, %v786_v54 }
 0x1fb   :  { %v1271_v47 = vmax.f32 %v1269_v43, %v1270_v22  ;;  %v1280_v20 = vmax.f32 %v1278_v27, %v1279_v0  ;;  %v1304_v38 = vmax.f32 %v1303_v13, %v1206_v34  ;;  %2377 = vbcast.lane.b32.xlu0 %v4565_v25, 288 }
 0x1fc   :  { %v1291_v53 = vmax.f32 %v1290_v52, %v1198_v56  ;;  %2179 = vbcast.lane.b32.xlu1 %v4431_v28, 312 }
 0x1fd   :  { %v1315_v6 = vpack.c.bf16 %v1271_v47, %v1271_v47  ;;  %v1281_v11 = vrot.slane %v1280_v20, 2  ;;  %v1305_v23 = vrot.slane %v1304_v38, 4 }
 0x1fe   :  { %v1292_v61 = vrot.slane %v1291_v53, 4 }
 0x1ff   :  { %v1699_v7 = vunpack.c.l.b16 %v1315_v6  ;;  %v1282_v48 = vmax.f32 %v1280_v20, %v1281_v11  ;;  %v1306_v62 = vmax.f32 %v1304_v38, %v1305_v23  ;;  %2214 = vbcast.lane.b32.xlu0 %v4444_v49, 312 }
 0x200   :  { %v1293_v40 = vmax.f32 %v1291_v53, %v1292_v61  ;;  %2280 = vbcast.lane.b32.xlu1 %v4482_v9, 304 }
 0x201   :  { %v1283_v63 = vrot.slane %v1282_v48, 1  ;;  %v1307_v42 = vrot.slane %v1306_v62, 2  ;;  %v1710_v1 = vsel %vm1709_vm4, %v1699_v7, %v1708_v10 }
 0x202   :  { %v1294_v17 = vrot.slane %v1293_v40, 2 }
 0x203   :  { %v1284_v5 = vmax.f32 %v1282_v48, %v1283_v63  ;;  %v1308_v37 = vmax.f32 %v1306_v62, %v1307_v42  ;;  %2346 = vbcast.lane.b32.xlu0 %v4534_v4, 296 }
 0x204   :  { %v1295_v16 = vmax.f32 %v1293_v40, %v1294_v17  ;;  %2412 = vbcast.lane.b32.xlu1 %v4616_v2, 288 }
 0x205   :  { %v1316_v14 = vpack.c.bf16 %v1284_v5, %v1284_v5  ;;  %v1309_v52 = vrot.slane %v1308_v37, 1 }
 0x206   :  { %v1296_v31 = vrot.slane %v1295_v16, 1 }
 0x207   :  { %v1700_v26 = vunpack.c.l.b16 %v1316_v14  ;;  %v1310_v32 = vmax.f32 %v1308_v37, %v1309_v52  ;;  %2249 = vbcast.lane.b32.xlu0 %v4456_v30, 312 }
 0x208   :  { %v1297_v45 = vmax.f32 %v1295_v16, %v1296_v31  ;;  %2315 = vbcast.lane.b32.xlu1 %v4499_v21, 304 }
 0x209   :  { %v1318_v28 = vpack.c.bf16 %v1310_v32, %v1310_v32  ;;  %v1712_v15 = vsel %vm1711_vm5, %v1700_v26, %v1710_v1 }
 0x20a   :  { %v1317_v59 = vpack.c.bf16 %v1297_v45, %v1297_v45 }
 0x20b   :  { %v1702_v19 = vunpack.c.l.b16 %v1318_v28  ;;  %2381 = vbcast.lane.b32.xlu0 %v4565_v25, 296 }
 0x20c   :  { %v1701_v49 = vunpack.c.l.b16 %v1317_v59  ;;  %2284 = vbcast.lane.b32.xlu1 %v4482_v9, 312 }
 0x20e   :  { %v1714_v12 = vsel %vm1713_vm6, %v1701_v49, %v1712_v15 }
 0x20f   :  { %v1716_v35 = vsel %vm1715_vm7, %v1702_v19, %v1714_v12  ;;  %2350 = vbcast.lane.b32.xlu0 %v4534_v4, 304 }
 0x210   :  { %v1717_v60 = vpack.c.b16 %v1716_v35, %v1716_v35  ;;  %2416 = vbcast.lane.b32.xlu1 %v4616_v2, 296 }
 0x211   :  { %v2152_v30 = vpop.permute.xlu0 %2151 }
 0x212   :  { %3165 = vmatmul.mubr.bf16.vlgmr.msra.gmra.mrb[4].mxu0 %v1717_v60  ;;  %v2156_v36 = vpop.permute.xlu1 %2155  ;;  %vm2426_vm9 = vcmp.eq.s32.totalorder %v4740_v24, %v2152_v30 }
 0x213   :  { %3204 = vmatprep.mubr.msk.bf16.mxu0 %vm3312_vm0, %v5167_v3  ;;  %vm2427_vm10 = vcmp.eq.s32.totalorder %v4740_v24, %v2156_v36  ;;  %v3003_v9 = vsel %vm2426_vm9, 1.0, %v5167_v3  ;;  %2319 = vbcast.lane.b32.xlu0 %v4499_v21, 312 }
 0x214   :  { %v3004_v8 = vsel %vm2427_vm10, 1.0, %v5167_v3  ;;  %2385 = vbcast.lane.b32.xlu1 %v4565_v25, 304  ;;  %v2619_v51 = vsel %vm2618_vm8, %v3003_v9, -inf }
 0x215   :  { %v2620_v50 = vsel %vm2618_vm8, %v3004_v8, -inf  ;;  %v2187_v10 = vpop.permute.xlu0 %2186 }
 0x216   :  { %v2621_v58 = vmax.f32 %v2619_v51, %v2620_v50  ;;  %v2191_v44 = vpop.permute.xlu1 %2190  ;;  %vm2434_vm11 = vcmp.eq.s32.totalorder %v4740_v24, %v2187_v10 }
 0x217   :  { %vm2435_vm12 = vcmp.eq.s32.totalorder %v4740_v24, %v2191_v44  ;;  %v3011_v33 = vsel %vm2434_vm11, 1.0, %v5167_v3  ;;  %2354 = vbcast.lane.b32.xlu0 %v4534_v4, 312 }
 0x218   :  { %v3012_v41 = vsel %vm2435_vm12, 1.0, %v5167_v3  ;;  %2420 = vbcast.lane.b32.xlu1 %v4616_v2, 304  ;;  %v2640_v21 = vsel %vm2618_vm8, %v3011_v33, -inf }
 0x219   :  { %v2641_v55 = vsel %vm2618_vm8, %v3012_v41, -inf  ;;  %v2222_v46 = vpop.permute.xlu0 %2221 }
 0x21a   :  { %v2642_v18 = vmax.f32 %v2640_v21, %v2641_v55  ;;  %v2226_v43 = vpop.permute.xlu1 %2225  ;;  %vm2442_vm13 = vcmp.eq.s32.totalorder %v4740_v24, %v2222_v46 }
 0x21b   :  { %vm2443_vm14 = vcmp.eq.s32.totalorder %v4740_v24, %v2226_v43  ;;  %v3019_v13 = vsel %vm2442_vm13, 1.0, %v5167_v3  ;;  %2389 = vbcast.lane.b32.xlu0 %v4565_v25, 312 }
 0x21c   :  { %v3020_v27 = vsel %vm2443_vm14, 1.0, %v5167_v3  ;;  %2424 = vbcast.lane.b32.xlu1 %v4616_v2, 312  ;;  %v2661_v4 = vsel %vm2618_vm8, %v3019_v13, -inf }
 0x21d   :  { %v2662_v29 = vsel %vm2618_vm8, %v3020_v27, -inf  ;;  %v2160_v57 = vpop.permute.xlu0 %2159 }
 0x21e   :  { %v2663_v54 = vmax.f32 %v2661_v4, %v2662_v29  ;;  %v2195_v22 = vpop.permute.xlu1 %2194  ;;  %vm2428_vm15 = vcmp.eq.s32.totalorder %v4740_v24, %v2160_v57 }
 0x21f   :  { %vm2436_vm9 = vcmp.eq.s32.totalorder %v4740_v24, %v2195_v22  ;;  %v3005_v0 = vsel %vm2428_vm15, 1.0, %v5167_v3 }
 0x220   :  { %v3013_v34 = vsel %vm2436_vm9, 1.0, %v5167_v3  ;;  %v2622_v56 = vsel %vm2618_vm8, %v3005_v0, -inf  ;;  %v3288_v0 = vld [vmem:[%s5087_s3 + $0x70] sm:$0xff]  }
 0x221   :  { %v2643_v25 = vsel %vm2618_vm8, %v3013_v34, -inf  ;;  %v4776_v2 = vmax.f32 %v2621_v58, %v2622_v56  ;;  %v2257_v20 = vpop.permute.xlu0 %2256  ;;  %3181 = vmatpush3.bf16.msra.mxu1 %v3288_v0  ;;  %v3297_v0 = vld [vmem:[%s5087_s3 + $0x98] sm:$0xff]  }
 0x222   :  { %v4778_v47 = vmax.f32 %v2642_v18, %v2643_v25  ;;  %v2261_v38 = vpop.permute.xlu1 %2260  ;;  %vm2450_vm10 = vcmp.eq.s32.totalorder %v4740_v24, %v2257_v20  ;;  %3182 = vmatprep.subr.bf16.mxu1 %v5167_v3  ;;  %v3289_v25 = vld [vmem:[%s5087_s3 + $0x78] sm:$0xff]  }
 0x223   :  { %vm2451_vm11 = vcmp.eq.s32.totalorder %v4740_v24, %v2261_v38  ;;  %v3027_v53 = vsel %vm2450_vm10, 1.0, %v5167_v3 }
 0x224   :  { %v3028_v6 = vsel %vm2451_vm11, 1.0, %v5167_v3  ;;  %v2682_v11 = vsel %vm2618_vm8, %v3027_v53, -inf }
 0x225   :  { %v2683_v23 = vsel %vm2618_vm8, %v3028_v6, -inf  ;;  %v2230_v7 = vpop.permute.xlu0 %2229  ;;  %3183 = vmatpush3.bf16.msra.mxu1 %v3289_v25 }
 0x226   :  { %v2684_v61 = vmax.f32 %v2682_v11, %v2683_v23  ;;  %v2292_v48 = vpop.permute.xlu1 %2291  ;;  %vm2444_vm12 = vcmp.eq.s32.totalorder %v4740_v24, %v2230_v7  ;;  %3208 = vmatprep.subr.bf16.mxu1 %v5167_v3 }
 0x227   :  { %vm2458_vm13 = vcmp.eq.s32.totalorder %v4740_v24, %v2292_v48  ;;  %v3021_v62 = vsel %vm2444_vm12, 1.0, %v5167_v3 }
 0x228   :  { %v3035_v40 = vsel %vm2458_vm13, 1.0, %v5167_v3  ;;  %v2664_v63 = vsel %vm2618_vm8, %v3021_v62, -inf }
 0x229   :  { %v4791_v42 = vmax.f32 %v2663_v54, %v2664_v63  ;;  %v2296_v1 = vpop.permute.xlu0 %2295  ;;  %v2703_v5 = vsel %vm2618_vm8, %v3035_v40, -inf }
 0x22a   :  { %v2164_v17 = vpop.permute.xlu1 %2163  ;;  %vm2459_vm14 = vcmp.eq.s32.totalorder %v4740_v24, %v2296_v1 }
 0x22b   :  { %vm2429_vm15 = vcmp.eq.s32.totalorder %v4740_v24, %v2164_v17  ;;  %v3036_v37 = vsel %vm2459_vm14, 1.0, %v5167_v3 }
 0x22c   :  { %v3006_v16 = vsel %vm2429_vm15, 1.0, %v5167_v3  ;;  %v2704_v14 = vsel %vm2618_vm8, %v3036_v37, -inf }
 0x22d   :  { %v4800_v52 = vsel %vm2618_vm8, %v3006_v16, -inf  ;;  %v2705_v31 = vmax.f32 %v2703_v5, %v2704_v14  ;;  %v2199_v32 = vpop.permute.xlu0 %2198 }
 0x22e   :  { %v2625_v26 = vmax.f32 %v4776_v2, %v4800_v52  ;;  %v2265_v45 = vpop.permute.xlu1 %2264  ;;  %vm2437_vm9 = vcmp.eq.s32.totalorder %v4740_v24, %v2199_v32 }
 0x22f   :  { %vm2452_vm10 = vcmp.eq.s32.totalorder %v4740_v24, %v2265_v45  ;;  %v3014_v28 = vsel %vm2437_vm9, 1.0, %v5167_v3 }
 0x230   :  { %v3029_v15 = vsel %vm2452_vm10, 1.0, %v5167_v3  ;;  %v2645_v59 = vsel %vm2618_vm8, %v3014_v28, -inf }
 0x231   :  { %v2685_v19 = vsel %vm2618_vm8, %v3029_v15, -inf  ;;  %v2646_v49 = vmax.f32 %v4778_v47, %v2645_v59  ;;  %v2327_v35 = vpop.permute.xlu0 %2326 }
 0x232   :  { %v4811_v12 = vmax.f32 %v2684_v61, %v2685_v19  ;;  %v2331_v60 = vpop.permute.xlu1 %2330  ;;  %vm2466_vm11 = vcmp.eq.s32.totalorder %v4740_v24, %v2327_v35 }
 0x233   :  { %vm2467_vm12 = vcmp.eq.s32.totalorder %v4740_v24, %v2331_v60  ;;  %v3043_v39 = vsel %vm2466_vm11, 1.0, %v5167_v3 }
 0x234   :  { %v3044_v30 = vsel %vm2467_vm12, 1.0, %v5167_v3  ;;  %v2724_v36 = vsel %vm2618_vm8, %v3043_v39, -inf }
 0x235   :  { %v2725_v9 = vsel %vm2618_vm8, %v3044_v30, -inf  ;;  %v2234_v51 = vpop.permute.xlu0 %2233 }
 0x236   :  { %v2726_v8 = vmax.f32 %v2724_v36, %v2725_v9  ;;  %v2300_v50 = vpop.permute.xlu1 %2299  ;;  %vm2445_vm13 = vcmp.eq.s32.totalorder %v4740_v24, %v2234_v51  ;;  %v3294_v36 = vld [vmem:[%s5087_s3 + $0x80] sm:$0xff]  }
 0x237   :  { %vm2460_vm14 = vcmp.eq.s32.totalorder %v4740_v24, %v2300_v50  ;;  %v3022_v58 = vsel %vm2445_vm13, 1.0, %v5167_v3  ;;  %3189 = vmatpush3.bf16.msra.mxu0 %v3294_v36 }
 0x238   :  { %v3037_v10 = vsel %vm2460_vm14, 1.0, %v5167_v3  ;;  %v2666_v44 = vsel %vm2618_vm8, %v3022_v58, -inf  ;;  %3190 = vmatprep.subr.bf16.mxu0 %v5167_v3 }
 0x239   :  { %v2706_v33 = vsel %vm2618_vm8, %v3037_v10, -inf  ;;  %v2667_v41 = vmax.f32 %v4791_v42, %v2666_v44  ;;  %v2362_v34 = vpop.permute.xlu0 %2361  ;;  %v3295_v10 = vld [vmem:[%s5087_s3 + $0x88] sm:$0xff]  }
 0x23a   :  { %v4826_v21 = vmax.f32 %v2705_v31, %v2706_v33  ;;  %v2366_v56 = vpop.permute.xlu1 %2365  ;;  %vm2474_vm15 = vcmp.eq.s32.totalorder %v4740_v24, %v2362_v34 }
 0x23b   :  { %vm2475_vm9 = vcmp.eq.s32.totalorder %v4740_v24, %v2366_v56  ;;  %v3051_v38 = vsel %vm2474_vm15, 1.0, %v5167_v3  ;;  %3191 = vmatpush3.bf16.msra.mxu0 %v3295_v10 }
 0x23c   :  { %v3052_v53 = vsel %vm2475_vm9, 1.0, %v5167_v3  ;;  %v2745_v11 = vsel %vm2618_vm8, %v3051_v38, -inf  ;;  %3192 = vmatprep.subr.bf16.mxu0 %v5167_v3 }
 0x23d   :  { %v2168_v47 = vpop.permute.xlu0 %2167  ;;  %v2746_v23 = vsel %vm2618_vm8, %v3052_v53, -inf }
 0x23e   :  { %vm2430_vm10 = vcmp.eq.s32.totalorder %v4740_v24, %v2168_v47  ;;  %v2203_v20 = vpop.permute.xlu1 %2202  ;;  %v2747_v48 = vmax.f32 %v2745_v11, %v2746_v23  ;;  %v3298_v11 = vld [vmem:[%s5087_s3 + $0xa0] sm:$0xff]  }
 0x23f   :  { %v3007_v6 = vsel %vm2430_vm10, 1.0, %v5167_v3  ;;  %vm2438_vm11 = vcmp.eq.s32.totalorder %v4740_v24, %v2203_v20 }
 0x240   :  { %v2626_v61 = vsel %vm2618_vm8, %v3007_v6, -inf  ;;  %v3015_v7 = vsel %vm2438_vm11, 1.0, %v5167_v3 }
 0x241   :  { %v4852_v62 = vmax.f32 %v2625_v26, %v2626_v61  ;;  %v2647_v40 = vsel %vm2618_vm8, %v3015_v7, -inf  ;;  %v2269_v63 = vpop.permute.xlu0 %2268 }
 0x242   :  { %v4855_v42 = vmax.f32 %v2646_v49, %v2647_v40  ;;  %vm2453_vm12 = vcmp.eq.s32.totalorder %v4740_v24, %v2269_v63  ;;  %v2335_v1 = vpop.permute.xlu1 %2334 }
 0x243   :  { %v3030_v17 = vsel %vm2453_vm12, 1.0, %v5167_v3  ;;  %vm2468_vm13 = vcmp.eq.s32.totalorder %v4740_v24, %v2335_v1  ;;  %v3299_v1 = vld [vmem:[%s5087_s3 + $0xa8] sm:$0xff]  }
 0x244   :  { %v3088_v55 = vpop.f32.mrb[0].mxu0  ;;  %v2687_v5 = vsel %vm2618_vm8, %v3030_v17, -inf  ;;  %v3045_v37 = vsel %vm2468_vm13, 1.0, %v5167_v3 }
 0x245   :  { %v3089_v18 = vpop.f32.mrb[1].mxu0  ;;  %v3110_v13 = vpop.f32.mrb[0].mxu1  ;;  %v2688_v2 = vmax.f32 %v4811_v12, %v2687_v5  ;;  %v2727_v16 = vsel %vm2618_vm8, %v3045_v37, -inf }
 0x246   :  { %v3090_v46 = vadd.f32 %v3089_v18, %v3088_v55  ;;  %v3091_v43 = vpop.f32.mrb[2].mxu0  ;;  %v3111_v4 = vpop.f32.mrb[1].mxu1  ;;  %v4866_v52 = vmax.f32 %v2726_v8, %v2727_v16 }
 0x247   :  { %v3092_v27 = vpop.f32.mrb[3].mxu0  ;;  %v3112_v29 = vadd.f32 %v3111_v4, %v3110_v13  ;;  %v3113_v54 = vpop.f32.mrb[2].mxu1  ;;  %v3296_v13 = vld [vmem:[%s5087_s3 + $0x90] sm:$0xff]  }
 0x248   :  { %v3114_v57 = vpop.f32.mrb[3].mxu1  ;;  %v4864_v14 = vpop.permute.xlu0 %2396  ;;  %3193 = vmatpush3.bf16.msra.mxu0 %v3296_v13 }
 0x249   :  { %v4828_v22 = vadd.f32 %v3112_v29, %v3090_v46  ;;  %v4868_v31 = vpop.permute.xlu1 %2400  ;;  %3194 = vmatprep.subr.bf16.mxu0 %v5167_v3 }
 0x24c   :  { %v2238_v26 = vpop.permute.xlu0 %2237  ;;  %3195 = vmatpush3.bf16.msra.mxu0 %v3297_v0 }
 0x24d   :  { %vm2446_vm14 = vcmp.eq.s32.totalorder %v4740_v24, %v2238_v26  ;;  %v2304_v32 = vpop.permute.xlu1 %2303  ;;  %3196 = vmatprep.subr.bf16.mxu0 %v5167_v3 }
 0x24e   :  { %v3023_v45 = vsel %vm2446_vm14, 1.0, %v5167_v3  ;;  %vm2461_vm15 = vcmp.eq.s32.totalorder %v4740_v24, %v2304_v32 }
 0x24f   :  { %v2668_v28 = vsel %vm2618_vm8, %v3023_v45, -inf  ;;  %v3038_v15 = vsel %vm2461_vm15, 1.0, %v5167_v3 }
 0x250   :  { %v4875_v59 = vmax.f32 %v2667_v41, %v2668_v28  ;;  %v2708_v19 = vsel %vm2618_vm8, %v3038_v15, -inf  ;;  %v2370_v49 = vpop.permute.xlu0 %2369  ;;  %3197 = vmatpush3.bf16.msra.mxu0 %v3298_v11 }
 0x251   :  { %v2709_v12 = vmax.f32 %v4826_v21, %v2708_v19  ;;  %vm2476_vm9 = vcmp.eq.s32.totalorder %v4740_v24, %v2370_v49  ;;  %v2172_v35 = vpop.permute.xlu1 %2171  ;;  %3198 = vmatprep.subr.bf16.mxu0 %v5167_v3 }
 0x252   :  { %v3053_v60 = vsel %vm2476_vm9, 1.0, %v5167_v3  ;;  %vm2431_vm10 = vcmp.eq.s32.totalorder %v4740_v24, %v2172_v35 }
 0x253   :  { %v2748_v39 = vsel %vm2618_vm8, %v3053_v60, -inf  ;;  %v3008_v30 = vsel %vm2431_vm10, 1.0, %v5167_v3 }
 0x254   :  { %v4887_v9 = vmax.f32 %v2747_v48, %v2748_v39  ;;  %v2628_v8 = vsel %vm2618_vm8, %v3008_v30, -inf  ;;  %v2207_v51 = vpop.permute.xlu0 %2206  ;;  %3199 = vmatpush3.bf16.msra.mxu0 %v3299_v1 }
 0x255   :  { %v2629_v50 = vmax.f32 %v4852_v62, %v2628_v8  ;;  %vm2439_vm11 = vcmp.eq.s32.totalorder %v4740_v24, %v2207_v51  ;;  %v2273_v58 = vpop.permute.xlu1 %2272  ;;  %3200 = vmatprep.subr.bf16.mxu0 %v5167_v3 }
 0x256   :  { %v3016_v44 = vsel %vm2439_vm11, 1.0, %v5167_v3  ;;  %vm2454_vm12 = vcmp.eq.s32.totalorder %v4740_v24, %v2273_v58 }
 0x257   :  { %v2649_v33 = vsel %vm2618_vm8, %v3016_v44, -inf  ;;  %v3031_v41 = vsel %vm2454_vm12, 1.0, %v5167_v3 }
 0x258   :  { %v2650_v21 = vmax.f32 %v4855_v42, %v2649_v33  ;;  %v2689_v55 = vsel %vm2618_vm8, %v3031_v41, -inf  ;;  %v2339_v18 = vpop.permute.xlu0 %2338 }
 0x259   :  { %v4902_v46 = vmax.f32 %v2688_v2, %v2689_v55  ;;  %vm2469_vm13 = vcmp.eq.s32.totalorder %v4740_v24, %v2339_v18  ;;  %v4905_v43 = vpop.permute.xlu1 %2404 }
 0x25a   :  { %v3046_v27 = vsel %vm2469_vm13, 1.0, %v5167_v3 }
 0x25b   :  { %v2729_v4 = vsel %vm2618_vm8, %v3046_v27, -inf }
 0x25c   :  { %v2730_v29 = vmax.f32 %v4866_v52, %v2729_v4  ;;  %v2242_v54 = vpop.permute.xlu0 %2241 }
 0x25d   :  { %vm2447_vm14 = vcmp.eq.s32.totalorder %v4740_v24, %v2242_v54  ;;  %v2308_v57 = vpop.permute.xlu1 %2307 }
 0x25e   :  { %v3024_v34 = vsel %vm2447_vm14, 1.0, %v5167_v3  ;;  %vm2462_vm15 = vcmp.eq.s32.totalorder %v4740_v24, %v2308_v57 }
 0x25f   :  { %v2670_v56 = vsel %vm2618_vm8, %v3024_v34, -inf  ;;  %v3039_v25 = vsel %vm2462_vm15, 1.0, %v5167_v3 }
 0x260   :  { %v2671_v47 = vmax.f32 %v4875_v59, %v2670_v56  ;;  %v2710_v20 = vsel %vm2618_vm8, %v3039_v25, -inf  ;;  %v2374_v38 = vpop.permute.xlu0 %2373 }
 0x261   :  { %v4925_v53 = vmax.f32 %v2709_v12, %v2710_v20  ;;  %vm2477_vm9 = vcmp.eq.s32.totalorder %v4740_v24, %v2374_v38  ;;  %v2176_v6 = vpop.permute.xlu1 %2175 }
 0x262   :  { %v3054_v23 = vsel %vm2477_vm9, 1.0, %v5167_v3  ;;  %vm2432_vm10 = vcmp.eq.s32.totalorder %v4740_v24, %v2176_v6 }
 0x263   :  { %v2750_v61 = vsel %vm2618_vm8, %v3054_v23, -inf  ;;  %v3009_v7 = vsel %vm2432_vm10, 1.0, %v5167_v3  ;;  %vm2482_vm10 = vcmp.eq.s32.totalorder %v4740_v24, %v4864_v14 }
 0x264   :  { %v2751_v48 = vmax.f32 %v4887_v9, %v2750_v61  ;;  %v2630_v62 = vsel %vm2618_vm8, %v3009_v7, -inf  ;;  %v2211_v40 = vpop.permute.xlu0 %2210  ;;  %v3059_v33 = vsel %vm2482_vm10, 1.0, %v5167_v3 }
 0x265   :  { %v2631_v63 = vmax.f32 %v2629_v50, %v2630_v62  ;;  %vm2440_vm11 = vcmp.eq.s32.totalorder %v4740_v24, %v2211_v40  ;;  %v2277_v42 = vpop.permute.xlu1 %2276  ;;  %v2766_v13 = vsel %vm2618_vm8, %v3059_v33, -inf }
 0x266   :  { %v3017_v17 = vsel %vm2440_vm11, 1.0, %v5167_v3  ;;  %vm2455_vm12 = vcmp.eq.s32.totalorder %v4740_v24, %v2277_v42  ;;  %vm2483_vm11 = vcmp.eq.s32.totalorder %v4740_v24, %v4868_v31 }
 0x267   :  { %v2651_v5 = vsel %vm2618_vm8, %v3017_v17, -inf  ;;  %v3032_v37 = vsel %vm2455_vm12, 1.0, %v5167_v3  ;;  %v3060_v14 = vsel %vm2483_vm11, 1.0, %v5167_v3 }
 0x268   :  { %v2652_v2 = vmax.f32 %v2650_v21, %v2651_v5  ;;  %v2691_v16 = vsel %vm2618_vm8, %v3032_v37, -inf  ;;  %v2343_v52 = vpop.permute.xlu0 %2342  ;;  %v2767_v27 = vsel %vm2618_vm8, %v3060_v14, -inf }
 0x269   :  { %v2692_v26 = vmax.f32 %v4902_v46, %v2691_v16  ;;  %vm2470_vm13 = vcmp.eq.s32.totalorder %v4740_v24, %v2343_v52  ;;  %v2409_v32 = vpop.permute.xlu1 %2408 }
 0x26a   :  { %v3047_v45 = vsel %vm2470_vm13, 1.0, %v5167_v3  ;;  %vm2485_vm10 = vcmp.eq.s32.totalorder %v4740_v24, %v2409_v32 }
 0x26b   :  { %v2731_v28 = vsel %vm2618_vm8, %v3047_v45, -inf  ;;  %v3062_v61 = vsel %vm2485_vm10, 1.0, %v5167_v3 }
 0x26c   :  { %v4953_v15 = vmax.f32 %v2730_v29, %v2731_v28  ;;  %v2246_v59 = vpop.permute.xlu0 %2245  ;;  %v2771_v5 = vsel %vm2618_vm8, %v3062_v61, -inf }
 0x26d   :  { %vm2448_vm14 = vcmp.eq.s32.totalorder %v4740_v24, %v2246_v59  ;;  %v2312_v19 = vpop.permute.xlu1 %2311 }
 0x26e   :  { %v3025_v49 = vsel %vm2448_vm14, 1.0, %v5167_v3  ;;  %vm2463_vm15 = vcmp.eq.s32.totalorder %v4740_v24, %v2312_v19  ;;  %vm2484_vm14 = vcmp.eq.s32.totalorder %v4740_v24, %v4905_v43 }
 0x26f   :  { %v2672_v12 = vsel %vm2618_vm8, %v3025_v49, -inf  ;;  %v3040_v35 = vsel %vm2463_vm15, 1.0, %v5167_v3  ;;  %v3061_v57 = vsel %vm2484_vm14, 1.0, %v5167_v3 }
 0x270   :  { %v2673_v60 = vmax.f32 %v2671_v47, %v2672_v12  ;;  %v4961_v39 = vsel %vm2618_vm8, %v3040_v35, -inf  ;;  %v2378_v30 = vpop.permute.xlu0 %2377  ;;  %v2768_v47 = vmax.f32 %v2766_v13, %v2767_v27 }
 0x271   :  { %v2713_v36 = vmax.f32 %v4925_v53, %v4961_v39  ;;  %vm2478_vm9 = vcmp.eq.s32.totalorder %v4740_v24, %v2378_v30  ;;  %v2180_v9 = vpop.permute.xlu1 %2179  ;;  %v2769_v53 = vsel %vm2618_vm8, %v3061_v57, -inf }
 0x272   :  { %v3055_v8 = vsel %vm2478_vm9, 1.0, %v5167_v3  ;;  %vm2433_vm12 = vcmp.eq.s32.totalorder %v4740_v24, %v2180_v9 }
 0x273   :  { %v2752_v51 = vsel %vm2618_vm8, %v3055_v8, -inf  ;;  %v3010_v50 = vsel %vm2433_vm12, 1.0, %v5167_v3 }
 0x274   :  { %v4974_v58 = vmax.f32 %v2751_v48, %v2752_v51  ;;  %v2632_v10 = vsel %vm2618_vm8, %v3010_v50, -inf  ;;  %v2215_v44 = vpop.permute.xlu0 %2214 }
 0x275   :  { %v2633_v41 = vmax.f32 %v2631_v63, %v2632_v10  ;;  %vm2441_vm13 = vcmp.eq.s32.totalorder %v4740_v24, %v2215_v44  ;;  %v2281_v31 = vpop.permute.xlu1 %2280  ;;  %v2770_v63 = vmax.f32 %v2768_v47, %v2769_v53 }
 0x276   :  { %v3018_v21 = vsel %vm2441_vm13, 1.0, %v5167_v3  ;;  %vm2456_vm15 = vcmp.eq.s32.totalorder %v4740_v24, %v2281_v31 }
 0x277   :  { %v2634_v55 = vrot.slane %v2633_v41, 4  ;;  %v2653_v18 = vsel %vm2618_vm8, %v3018_v21, -inf  ;;  %v3033_v46 = vsel %vm2456_vm15, 1.0, %v5167_v3  ;;  %v2772_v49 = vmax.f32 %v2770_v63, %v2771_v5 }
 0x278   :  { %v2654_v4 = vmax.f32 %v2652_v2, %v2653_v18  ;;  %v2693_v29 = vsel %vm2618_vm8, %v3033_v46, -inf  ;;  %v2347_v54 = vpop.permute.xlu0 %2346 }
 0x279   :  { %v2635_v43 = vmax.f32 %v2633_v41, %v2634_v55  ;;  %v2694_v0 = vmax.f32 %v2692_v26, %v2693_v29  ;;  %vm2471_vm9 = vcmp.eq.s32.totalorder %v4740_v24, %v2347_v54  ;;  %v2413_v34 = vpop.permute.xlu1 %2412 }
 0x27a   :  { %v2655_v56 = vrot.slane %v2654_v4, 4  ;;  %v3048_v25 = vsel %vm2471_vm9, 1.0, %v5167_v3  ;;  %vm2486_vm12 = vcmp.eq.s32.totalorder %v4740_v24, %v2413_v34 }
 0x27b   :  { %v2636_v20 = vrot.slane %v2635_v43, 2  ;;  %v2733_v38 = vsel %vm2618_vm8, %v3048_v25, -inf  ;;  %v3063_v32 = vsel %vm2486_vm12, 1.0, %v5167_v3 }
 0x27c   :  { %v2656_v6 = vmax.f32 %v2654_v4, %v2655_v56  ;;  %v2734_v11 = vmax.f32 %v4953_v15, %v2733_v38  ;;  %v2250_v23 = vpop.permute.xlu0 %2249  ;;  %v2773_v50 = vsel %vm2618_vm8, %v3063_v32, -inf }
 0x27d   :  { %v2637_v7 = vmax.f32 %v2635_v43, %v2636_v20  ;;  %vm2449_vm11 = vcmp.eq.s32.totalorder %v4740_v24, %v2250_v23  ;;  %v2316_v48 = vpop.permute.xlu1 %2315  ;;  %v2774_v27 = vmax.f32 %v2772_v49, %v2773_v50 }
 0x27e   :  { %v2657_v62 = vrot.slane %v2656_v6, 2  ;;  %v3026_v40 = vsel %vm2449_vm11, 1.0, %v5167_v3  ;;  %vm2464_vm13 = vcmp.eq.s32.totalorder %v4740_v24, %v2316_v48 }
 0x27f   :  { %v2638_v42 = vrot.slane %v2637_v7, 1  ;;  %v2674_v1 = vsel %vm2618_vm8, %v3026_v40, -inf  ;;  %v3041_v17 = vsel %vm2464_vm13, 1.0, %v5167_v3 }
 0x280   :  { %v2658_v37 = vmax.f32 %v2656_v6, %v2657_v62  ;;  %v2675_v2 = vmax.f32 %v2673_v60, %v2674_v1  ;;  %v2714_v16 = vsel %vm2618_vm8, %v3041_v17, -inf  ;;  %v2382_v52 = vpop.permute.xlu0 %2381 }
 0x281   :  { %v2639_v26 = vmax.f32 %v2637_v7, %v2638_v42  ;;  %v2715_v45 = vmax.f32 %v2713_v36, %v2714_v16  ;;  %vm2479_vm14 = vcmp.eq.s32.totalorder %v4740_v24, %v2382_v52  ;;  %v2285_v28 = vpop.permute.xlu1 %2284 }
 0x282   :  { %v2659_v15 = vrot.slane %v2658_v37, 1  ;;  %v2676_v59 = vrot.slane %v2675_v2, 4  ;;  %v3056_v19 = vsel %vm2479_vm14, 1.0, %v5167_v3  ;;  %vm2457_vm15 = vcmp.eq.s32.totalorder %v4740_v24, %v2285_v28 }
 0x283   :  { %v2787_v12 = vpack.c.bf16 %v2639_v26, %v2639_v26  ;;  %v2754_v35 = vsel %vm2618_vm8, %v3056_v19, -inf  ;;  %v3034_v60 = vsel %vm2457_vm15, 1.0, %v5167_v3 }
 0x284   :  { %v2660_v39 = vmax.f32 %v2658_v37, %v2659_v15  ;;  %v2677_v30 = vmax.f32 %v2675_v2, %v2676_v59  ;;  %v2755_v9 = vmax.f32 %v4974_v58, %v2754_v35  ;;  %v2695_v36 = vsel %vm2618_vm8, %v3034_v60, -inf  ;;  %v2351_v8 = vpop.permute.xlu0 %2350 }
 0x285   :  { %v2811_v51 = vunpack.c.l.b16 %v2787_v12  ;;  %v2696_v10 = vmax.f32 %v2694_v0, %v2695_v36  ;;  %vm2472_vm9 = vcmp.eq.s32.totalorder %v4740_v24, %v2351_v8  ;;  %v2417_v44 = vpop.permute.xlu1 %2416 }
 0x286   :  { %v2788_v33 = vpack.c.bf16 %v2660_v39, %v2660_v39  ;;  %v2678_v14 = vrot.slane %v2677_v30, 2  ;;  %v3049_v41 = vsel %vm2472_vm9, 1.0, %v5167_v3  ;;  %vm2487_vm10 = vcmp.eq.s32.totalorder %v4740_v24, %v2417_v44 }
 0x287   :  { %v2697_v31 = vrot.slane %v2696_v10, 4  ;;  %v2735_v21 = vsel %vm2618_vm8, %v3049_v41, -inf  ;;  %v3064_v58 = vsel %vm2487_vm10, 1.0, %v5167_v3 }
 0x288   :  { %v2812_v55 = vunpack.c.l.b16 %v2788_v33  ;;  %v2679_v18 = vmax.f32 %v2677_v30, %v2678_v14  ;;  %v2736_v46 = vmax.f32 %v2734_v11, %v2735_v21  ;;  %v2320_v13 = vpop.permute.xlu0 %2319  ;;  %v2775_v29 = vsel %vm2618_vm8, %v3064_v58, -inf }
 0x289   :  { %v2698_v4 = vmax.f32 %v2696_v10, %v2697_v31  ;;  %vm2465_vm11 = vcmp.eq.s32.totalorder %v4740_v24, %v2320_v13  ;;  %v2386_v54 = vpop.permute.xlu1 %2385  ;;  %v2776_v11 = vmax.f32 %v2774_v27, %v2775_v29 }
 0x28a   :  { %v2819_v57 = vsel %vm1703_vm1, %v2812_v55, %v2811_v51  ;;  %v2680_v43 = vrot.slane %v2679_v18, 1  ;;  %v3042_v0 = vsel %vm2465_vm11, 1.0, %v5167_v3  ;;  %vm2480_vm12 = vcmp.eq.s32.totalorder %v4740_v24, %v2386_v54 }
 0x28b   :  { %v2699_v34 = vrot.slane %v2698_v4, 2  ;;  %v2716_v56 = vsel %vm2618_vm8, %v3042_v0, -inf  ;;  %v3057_v25 = vsel %vm2480_vm12, 1.0, %v5167_v3 }
 0x28c   :  { %v2681_v47 = vmax.f32 %v2679_v18, %v2680_v43  ;;  %v2717_v20 = vmax.f32 %v2715_v45, %v2716_v56  ;;  %v2756_v38 = vsel %vm2618_vm8, %v3057_v25, -inf  ;;  %v2355_v53 = vpop.permute.xlu0 %2354 }
 0x28d   :  { %v2700_v6 = vmax.f32 %v2698_v4, %v2699_v34  ;;  %v2757_v23 = vmax.f32 %v2755_v9, %v2756_v38  ;;  %vm2473_vm1 = vcmp.eq.s32.totalorder %v4740_v24, %v2355_v53  ;;  %v2421_v61 = vpop.permute.xlu1 %2420 }
 0x28e   :  { %v2789_v7 = vpack.c.bf16 %v2681_v47, %v2681_v47  ;;  %v2718_v48 = vrot.slane %v2717_v20, 4  ;;  %v3050_v62 = vsel %vm2473_vm1, 1.0, %v5167_v3  ;;  %vm2488_vm13 = vcmp.eq.s32.totalorder %v4740_v24, %v2421_v61 }
 0x28f   :  { %v2701_v40 = vrot.slane %v2700_v6, 1  ;;  %v2737_v63 = vsel %vm2618_vm8, %v3050_v62, -inf  ;;  %v3065_v42 = vsel %vm2488_vm13, 1.0, %v5167_v3 }
 0x290   :  { %v2813_v1 = vunpack.c.l.b16 %v2789_v7  ;;  %v2719_v17 = vmax.f32 %v2717_v20, %v2718_v48  ;;  %v2738_v5 = vmax.f32 %v2736_v46, %v2737_v63  ;;  %v2777_v37 = vsel %vm2618_vm8, %v3065_v42, -inf  ;;  %v2390_v2 = vpop.permute.xlu0 %2389 }
 0x291   :  { %v2702_v16 = vmax.f32 %v2700_v6, %v2701_v40  ;;  %v2778_v52 = vmax.f32 %v2776_v11, %v2777_v37  ;;  %vm2481_vm14 = vcmp.eq.s32.totalorder %v4740_v24, %v2390_v2  ;;  %v2425_v26 = vpop.permute.xlu1 %2424  ;;  %v5169_v6 = vld [vmem:[#allocation2_spill] sm:$0xff]  ;;  %v3291_v2 = vld [vmem:[%s5088_s5 + $0x8] sm:$0xff]  }
 0x292   :  { %v2820_v32 = vsel %vm1705_vm2, %v2813_v1, %v2819_v57  ;;  %v2720_v45 = vrot.slane %v2719_v17, 2  ;;  %v2739_v28 = vrot.slane %v2738_v5, 4  ;;  %v3058_v15 = vsel %vm2481_vm14, 1.0, %v5167_v3 }
 0x293   :  { %v2790_v59 = vpack.c.bf16 %v2702_v16, %v2702_v16  ;;  %v2758_v19 = vsel %vm2618_vm8, %v3058_v15, -inf  ;;  %vm2489_vm15 = vcmp.eq.s32.totalorder %v4740_v24, %v2425_v26  ;;  %v1809_v11 = vsub.s32 3, %v5169_v6  ;;  %v3293_v16 = vld [vmem:[%s5088_s5 + $0x18] sm:$0xff]   ;;  %v3300_v26 = vld [vmem:[%s5087_s3 + $0xb0] sm:$0xff]  }
 0x294   :  { %v2721_v49 = vmax.f32 %v2719_v17, %v2720_v45  ;;  %v2740_v12 = vmax.f32 %v2738_v5, %v2739_v28  ;;  %v2759_v35 = vmax.f32 %v2757_v23, %v2758_v19  ;;  %v3066_v60 = vsel %vm2489_vm15, 1.0, %v5167_v3  ;;  %v3310_v23 = vld [vmem:[%s5084_s4] sm:$0x3f]  ;;  %3201 = vmatpush3.bf16.msra.mxu0 %v3300_v26 }
 0x295   :  { %v2814_v39 = vunpack.c.l.b16 %v2790_v59  ;;  %v2779_v30 = vsel %vm2618_vm8, %v3066_v60, -inf  ;;  %v1810_v61 = vrot.slane %v3310_v23, %v1809_v11  ;;  %v3290_v5 = vld [vmem:[%s5088_s5] sm:$0xff]   ;;  %3202 = vmatprep.subr.bf16.mxu0 %v5167_v3  ;;  %v1835_v45 = vsub.s32 4, %v5169_v6 }
 0x296   :  { %v2722_v9 = vrot.slane %v2721_v49, 1  ;;  %v2741_v36 = vrot.slane %v2740_v12, 2  ;;  %v2760_v8 = vrot.slane %v2759_v35, 4  ;;  %v2780_v51 = vmax.f32 %v2778_v52, %v2779_v30 }
 0x297   :  { %v2821_v50 = vsel %vm1707_vm3, %v2814_v39, %v2820_v32  ;;  %v3301_v32 = vld [vmem:[%s5087_s3 + $0xb8] sm:$0xff]   ;;  %v1836_v28 = vrot.slane %v3310_v23, %v1835_v45 }
 0x298   :  { %v2723_v10 = vmax.f32 %v2721_v49, %v2722_v9  ;;  %v2742_v44 = vmax.f32 %v2740_v12, %v2741_v36  ;;  %v2761_v33 = vmax.f32 %v2759_v35, %v2760_v8  ;;  %v2781_v14 = vrot.slane %v2780_v51, 4  ;;  %3203 = vmatpush3.bf16.msra.mxu0 %v3301_v32 }
 0x299   :  { %v1948_v8 = vsub.s32 5, %v5169_v6 }
 0x29a   :  { %v2791_v41 = vpack.c.bf16 %v2723_v10, %v2723_v10  ;;  %v2743_v24 = vrot.slane %v2742_v44, 1  ;;  %v2762_v31 = vrot.slane %v2761_v33, 2  ;;  %v2782_v21 = vmax.f32 %v2780_v51, %v2781_v14 }
 0x29b   :  { %v1949_v51 = vrot.slane %v3310_v23, %v1948_v8 }
 0x29c   :  { %v2815_v58 = vunpack.c.l.b16 %v2791_v41  ;;  %v2744_v55 = vmax.f32 %v2742_v44, %v2743_v24  ;;  %v2763_v18 = vmax.f32 %v2761_v33, %v2762_v31  ;;  %v2783_v46 = vrot.slane %v2782_v21, 2 }
 0x29e   :  { %v2822_v13 = vsel %vm1709_vm4, %v2815_v58, %v2821_v50  ;;  %v2792_v27 = vpack.c.bf16 %v2744_v55, %v2744_v55  ;;  %v2764_v4 = vrot.slane %v2763_v18, 1  ;;  %v2784_v29 = vmax.f32 %v2782_v21, %v2783_v46 }
 0x2a0   :  { %v2816_v54 = vunpack.c.l.b16 %v2792_v27  ;;  %v2765_v57 = vmax.f32 %v2763_v18, %v2764_v4  ;;  %v2785_v43 = vrot.slane %v2784_v29, 1 }
 0x2a2   :  { %v2823_v0 = vsel %vm1711_vm5, %v2816_v54, %v2822_v13  ;;  %v2793_v34 = vpack.c.bf16 %v2765_v57, %v2765_v57  ;;  %v2786_v56 = vmax.f32 %v2784_v29, %v2785_v43 }
 0x2a4   :  { %v2817_v25 = vunpack.c.l.b16 %v2793_v34  ;;  %v2794_v47 = vpack.c.bf16 %v2786_v56, %v2786_v56 }
 0x2a6   :  { %v2818_v20 = vunpack.c.l.b16 %v2794_v47  ;;  %v2824_v38 = vsel %vm1713_vm6, %v2817_v25, %v2823_v0 }
 0x2a8   :  { %v2825_v53 = vsel %vm1715_vm7, %v2818_v20, %v2824_v38 }
 0x2a9   :  { %v2826_v52 = vpack.c.b16 %v2825_v53, %v2825_v53 }
 0x2e5   :  { %v1801_v7 = vpop.f32.mrb[4].mxu0 }
 0x2e6   :  { %v1802_v48 = vadd.f32 %v1801_v7, %v4828_v22  ;;  %v3166_v62 = vpop.f32.mrb[5].mxu0  ;;  %v3292_v22 = vld [vmem:[%s5088_s5 + $0x10] sm:$0xff]  }
 0x2e7   :  { %v1804_v40 = vpop.f32.mrb[6].mxu0 }
 0x2e8   :  { %v1811_v63 = vadd.f32 %v1810_v61, %v1802_v48  ;;  %v3167_v42 = vpop.f32.mrb[7].mxu0 }
 0x2ea   :  { %vm1812_vm2 = vcmp.gt.f32.partialorder %v1811_v63, 0.0  ;;  %v1813_v1 = vmul.f32 0.2, %v1811_v63 }
 0x2ec   :  { %v1814_v17 = vsel %vm1812_vm2, %v1811_v63, %v1813_v1 }
 0x2ed   :  { %v1815_v37 = vpack.c.bf16 %v1814_v17, %v1814_v17 }
 0x2ef   :  { %3185 = vmatmul.mubr.bf16.vlgmr.msra.gmra.mrb[4].mxu1 %v1815_v37 }
 0x2f0   :  { %3209 = vmatpush3.bf16.msra.mxu1 %v3290_v5  ;;  %3216 = vmatprep.mubr.msk.bf16.mxu1 %vm3312_vm0, %v5167_v3 }
 0x2f1   :  { %3210 = vmatprep.subr.bf16.mxu1 %v5167_v3 }
 0x2f4   :  { %3211 = vmatpush3.bf16.msra.mxu1 %v3291_v2 }
 0x2f5   :  { %3212 = vmatprep.subr.bf16.mxu1 %v5167_v3 }
 0x2f8   :  { %3213 = vmatpush3.bf16.msra.mxu1 %v3292_v22 }
 0x2f9   :  { %3214 = vmatprep.subr.bf16.mxu1 %v5167_v3 }
 0x2fc   :  { %3215 = vmatpush3.bf16.msra.mxu1 %v3293_v16 }
 0x2ff   :  { %3217 = vmatmul.mubr.msk.bf16.vlgmr.msra.gmra.mrb[8].mxu1 %vm2618_vm8, %v2826_v52 }
 0x3c2   :  { %v1919_v15 = vpop.f32.mrb[4].mxu1 }
 0x3c3   :  { %v1920_v59 = vadd.f32 %v1919_v15, %v1836_v28  ;;  %v3186_v19 = vpop.f32.mrb[5].mxu1 }
 0x3c4   :  { %v1922_v49 = vpop.f32.mrb[6].mxu1 }
 0x3c5   :  { %vm1925_vm0 = vcmp.gt.f32.partialorder %v1920_v59, 0.0  ;;  %v1926_v12 = vmul.f32 0.2, %v1920_v59  ;;  %v3187_v35 = vpop.f32.mrb[7].mxu1 }
 0x3c7   :  { %v1927_v60 = vsel %vm1925_vm0, %v1920_v59, %v1926_v12 }
 0x3c8   :  { %v1928_v39 = vpack.c.bf16 %v1927_v60, %v1927_v60 }
 0x3ca   :  { %3205 = vmatmul.mubr.bf16.vlgmr.msra.gmra.mrb[8].mxu0 %v1928_v39 }
 0x3d2   :  { %v2888_v30 = vpop.f32.mrb[8].mxu1 }
 0x3d3   :  { %2894 = vst [vmem:[%s5089_s7] sm:$0xff] %v2888_v30  ;;  %v3218_v3 = vpop.f32.mrb[9].mxu1 }
 0x3d4   :  { %v2891_v9 = vpop.f32.mrb[10].mxu1 }
 0x3d5   :  { %v3219_v36 = vpop.f32.mrb[11].mxu1 }
 0x49d   :  { %v2032_v50 = vpop.f32.mrb[8].mxu0 }
 0x49e   :  { %v2033_v10 = vadd.f32 %v2032_v50, %v1949_v51  ;;  %v3206_v44 = vpop.f32.mrb[9].mxu0 }
 0x49f   :  { %v2035_v33 = vpop.f32.mrb[10].mxu0 }
 0x4a0   :  { %2038 = vst [vmem:[%s5090_s6] sm:$0xff] %v2033_v10  ;;  %v3207_v14 = vpop.f32.mrb[11].mxu0 }

</bundles_post_ra>
